<compile_context>
chip_gen: v7x
topology: tpu7x:2x2x1
jax: 0.10.0
libtpu: 0.0.40
codegen_flags: <defaults>
</compile_context>

<pallas_src>
import functools

import jax
import jax.numpy as jnp
import numpy as np
from jax.experimental import pallas as pl
from jax.experimental.pallas import tpu as pltpu


# ----------------------------- reference-side math helpers --------------------

def _sigmoid(x):
    return 1.0 / (1.0 + jnp.exp(-x))


def _elu(x):
    # torch.nn.ELU(alpha=1.0)
    return jnp.where(x > 0, x, jnp.exp(x) - 1.0)


def _layer_norm(x, gamma, beta, eps=1e-5):
    mean = jnp.mean(x, axis=-1, keepdims=True)
    var = jnp.mean((x - mean) ** 2, axis=-1, keepdims=True)
    return (x - mean) * jax.lax.rsqrt(var + eps) * gamma + beta


def _grn(x, skip_w, skip_b, fc1_w, fc1_b, fc2_w, fc2_b,
         glu_w, glu_b, ln_g, ln_b, ctx=None, ctx_w=None):
    """GatedResidualNetwork forward (dropout=0, trainable_add=False)."""
    skip = jnp.dot(x, skip_w, preferred_element_type=jnp.float32) + skip_b
    h = jnp.dot(x, fc1_w, preferred_element_type=jnp.float32) + fc1_b
    if ctx is not None:
        h = h + jnp.dot(ctx, ctx_w, preferred_element_type=jnp.float32)
    h = _elu(h)
    h = jnp.dot(h, fc2_w, preferred_element_type=jnp.float32) + fc2_b
    g = jnp.dot(h, glu_w, preferred_element_type=jnp.float32) + glu_b
    k = glu_w.shape[-1] // 2
    glu_out = g[:, :k] * _sigmoid(g[:, k:])            # torch F.glu(dim=-1)
    return _layer_norm(glu_out + skip, ln_g, ln_b)     # AddNorm (LayerNorm)


# ----------------------------- Pallas kernel ----------------------------------

def _vsn_kernel(N, D, H,
                x_ref,
                w1f_ref, b1f_ref,
                w1v_ref, b1v_ref,
                f_fc2_w_ref, f_fc2_b_ref, f_glu_w_ref, f_glu_b_ref,
                f_ln_g_ref, f_ln_b_ref,
                w2v_ref, b2v_ref, wglu_v_ref, bglu_v_ref,
                vln_g_ref, vln_b_ref,
                a_ref, e_ref, s_ref,
                out_ref):
    ND, NH = N * D, N * H
    x_cat = x_ref[...]                                  # (TM, ND + C)
    x_flat = x_cat[:, :ND]                              # (TM, ND)

    # ---- flatten GRN: fused fc1(+ctx) || skip projection (one matmul) -------
    o1f = jnp.dot(x_cat, w1f_ref[...],
                  preferred_element_type=jnp.float32) + b1f_ref[...]
    h_f = o1f[:, :H]                                    # fc1(x) + ctx_fc(ctx)
    skip_f = o1f[:, H:]                                 # skip projection

    # ---- per-variable GRNs: fused block-diagonal fc1 || skip (one matmul) ---
    o1v = jnp.dot(x_flat, w1v_ref[...],
                  preferred_element_type=jnp.float32) + b1v_ref[...]
    h_v = o1v[:, :NH]
    skip_v = o1v[:, NH:]

    # ELU
    h_f = jnp.where(h_f > 0, h_f, jnp.exp(h_f) - 1.0)
    h_v = jnp.where(h_v > 0, h_v, jnp.exp(h_v) - 1.0)

    # fc2
    h2_f = jnp.dot(h_f, f_fc2_w_ref[...],
                   preferred_element_type=jnp.float32) + f_fc2_b_ref[...]
    h2_v = jnp.dot(h_v, w2v_ref[...],
                   preferred_element_type=jnp.float32) + b2v_ref[...]

    # GLU (flatten: torch layout [values | gates]; per-var: pre-permuted)
    g_f = jnp.dot(h2_f, f_glu_w_ref[...],
                  preferred_element_type=jnp.float32) + f_glu_b_ref[...]
    glu_f = g_f[:, :N] * _sigmoid(g_f[:, N:])
    g_v = jnp.dot(h2_v, wglu_v_ref[...],
                  preferred_element_type=jnp.float32) + bglu_v_ref[...]
    glu_v = g_v[:, :NH] * _sigmoid(g_v[:, NH:])

    # ---- flatten-GRN AddNorm (LayerNorm over N) + softmax over variables ----
    y_f = glu_f + skip_f
    mu = jnp.mean(y_f, axis=-1, keepdims=True)
    var = jnp.mean((y_f - mu) ** 2, axis=-1, keepdims=True)
    logits = (y_f - mu) * jax.lax.rsqrt(var + 1e-5) * f_ln_g_ref[...] \
        + f_ln_b_ref[...]
    mx = jnp.max(logits, axis=-1, keepdims=True)
    ex = jnp.exp(logits - mx)
    denom = jnp.sum(ex, axis=-1, keepdims=True)
    weights = ex * pl.reciprocal(denom, approx=True)    # (TM, N)  EUP divide

    # ---- per-variable AddNorm: block LayerNorm over each H block via MXU ----
    y_v = glu_v + skip_v                                # (TM, NH)
    mean_v = jnp.dot(y_v, a_ref[...], preferred_element_type=jnp.float32)
    diff = y_v - mean_v
    var_v = jnp.dot(diff * diff, a_ref[...], preferred_element_type=jnp.float32)
    normed = diff * jax.lax.rsqrt(var_v + 1e-5) * vln_g_ref[...] + vln_b_ref[...]

    # ---- weighted sum over variables (expand weights / reduce blocks on MXU)
    w_exp = jnp.dot(weights, e_ref[...], preferred_element_type=jnp.float32)
    out_h = jnp.dot(normed * w_exp, s_ref[...],
                    preferred_element_type=jnp.float32)  # (TM, H)

    # single fused lane-contiguous store: [selected features | weights]
    out_ref[...] = jnp.concatenate([out_h, weights], axis=-1)


# ----------------------------- parameters -------------------------------------

def init_params(key, num_vars, input_dim, hidden, context_size):
    """Deterministic synthetic init mirroring the module's parameter shapes.

    Linear weights stored as (in_features, out_features) so y = x @ W + b.
    Biases are zeros (as in the module's init), LayerNorm gamma=1 beta=0.
    """
    nd = num_vars * input_dim
    keys = jax.random.split(key, 9)

    def w(k, shape, scale=0.2):
        return (scale * jax.random.normal(k, shape)).astype(jnp.float32)

    z = lambda shape: jnp.zeros(shape, jnp.float32)
    o = lambda shape: jnp.ones(shape, jnp.float32)

    return dict(
        # flatten_grn: input = N*D, hidden = H, output = N, context = C
        f_skip_w=w(keys[0], (nd, num_vars)),
        f_skip_b=z((1, num_vars)),
        f_fc1_w=w(keys[1], (nd, hidden)),
        f_fc1_b=z((1, hidden)),
        f_ctx_w=w(keys[2], (context_size, hidden)),      # no bias (torch)
        f_fc2_w=w(keys[3], (hidden, hidden)),
        f_fc2_b=z((1, hidden)),
        f_glu_w=w(keys[4], (hidden, 2 * num_vars)),
        f_glu_b=z((1, 2 * num_vars)),
        f_ln_g=o((1, num_vars)),
        f_ln_b=z((1, num_vars)),
        # var_grns[i]: input = D, hidden = H, output = H  (stacked on axis 0)
        v_skip_w=w(keys[5], (num_vars, input_dim, hidden)),
        v_skip_b=z((num_vars, 1, hidden)),
        v_fc1_w=w(keys[6], (num_vars, input_dim, hidden)),
        v_fc1_b=z((num_vars, 1, hidden)),
        v_fc2_w=w(keys[7], (num_vars, hidden, hidden)),
        v_fc2_b=z((num_vars, 1, hidden)),
        v_glu_w=w(keys[8], (num_vars, hidden, 2 * hidden)),
        v_glu_b=z((num_vars, 1, 2 * hidden)),
        v_ln_g=o((num_vars, 1, hidden)),
        v_ln_b=z((num_vars, 1, hidden)),
    )


def _block_diag(blocks):
    r = sum(b.shape[0] for b in blocks)
    c = sum(b.shape[1] for b in blocks)
    out = jnp.zeros((r, c), jnp.float32)
    ro = co = 0
    for b in blocks:
        out = out.at[ro:ro + b.shape[0], co:co + b.shape[1]].set(b)
        ro += b.shape[0]
        co += b.shape[1]
    return out


def pack_params(params, N, D, H, C):
    """Host-side packing of the module parameters into lane-dense kernel args."""
    ND, NH = N * D, N * H

    # flatten GRN fused first layer: [x_flat | ctx] @ W1f -> [fc1+ctx | skip]
    w1f = jnp.zeros((ND + C, H + N), jnp.float32)
    w1f = w1f.at[:ND, :H].set(params["f_fc1_w"])
    w1f = w1f.at[ND:, :H].set(params["f_ctx_w"])
    w1f = w1f.at[:ND, H:].set(params["f_skip_w"])
    b1f = jnp.concatenate([params["f_fc1_b"], params["f_skip_b"]], axis=1)

    # per-variable GRNs: block-diagonal fc1 || skip
    fc1_bd = _block_diag([params["v_fc1_w"][n] for n in range(N)])     # (ND, NH)
    skip_bd = _block_diag([params["v_skip_w"][n] for n in range(N)])   # (ND, NH)
    w1v = jnp.concatenate([fc1_bd, skip_bd], axis=1)                   # (ND, 2NH)
    b1v = jnp.concatenate([params["v_fc1_b"].reshape(1, NH),
                           params["v_skip_b"].reshape(1, NH)], axis=1)

    w2v = _block_diag([params["v_fc2_w"][n] for n in range(N)])        # (NH, NH)
    b2v = params["v_fc2_b"].reshape(1, NH)

    # per-variable GLU, columns permuted to [all values | all gates]
    glu_val_bd = _block_diag([params["v_glu_w"][n][:, :H] for n in range(N)])
    glu_gate_bd = _block_diag([params["v_glu_w"][n][:, H:] for n in range(N)])
    wglu_v = jnp.concatenate([glu_val_bd, glu_gate_bd], axis=1)        # (NH, 2NH)
    bglu_v = jnp.concatenate([params["v_glu_b"][:, 0, :H].reshape(1, NH),
                              params["v_glu_b"][:, 0, H:].reshape(1, NH)], axis=1)

    vln_g = params["v_ln_g"].reshape(1, NH)
    vln_b = params["v_ln_b"].reshape(1, NH)

    # constant matrices: block averaging (LayerNorm), weight expand, block sum
    a_mat = _block_diag([jnp.full((H, H), 1.0 / H, jnp.float32)] * N)  # (NH, NH)
    e_mat = jnp.repeat(jnp.eye(N, dtype=jnp.float32), H, axis=1)       # (N, NH)
    s_mat = jnp.tile(jnp.eye(H, dtype=jnp.float32), (N, 1))            # (NH, H)

    return [w1f, b1f, w1v, b1v,
            params["f_fc2_w"], params["f_fc2_b"],
            params["f_glu_w"], params["f_glu_b"],
            params["f_ln_g"], params["f_ln_b"],
            w2v, b2v, wglu_v, bglu_v, vln_g, vln_b,
            a_mat, e_mat, s_mat]


# ----------------------------- wrapper -----------------------------------------

def _choose_tile_m(M, target=256):
    """Large row tile (multiple of 8), but keep >=2 grid steps when possible
    so the 'parallel' axis can shard across both v7x TensorCores."""
    half = -(-((M + 1) // 2) // 8) * 8
    return max(8, min(target, half))


def vsn_forward(embedding, context, params, tile_m_target=256):
    """embedding: (B, T, N, D); context: (B, C). Returns ((B,T,H), (B,T,N))."""
    B, T, N, D = embedding.shape
    C = context.shape[-1]
    H = params["f_fc1_w"].shape[1]
    ND = N * D
    M = B * T

    tile_m = _choose_tile_m(M, tile_m_target)
    M_pad = pl.cdiv(M, tile_m) * tile_m
    grid = (M_pad // tile_m,)

    flat = embedding.reshape(M, ND).astype(jnp.float32)
    ctx = jnp.broadcast_to(context[:, None, :].astype(jnp.float32),
                           (B, T, C)).reshape(M, C)
    x_cat = jnp.concatenate([flat, ctx], axis=1)         # (M, ND + C)
    if M_pad != M:
        x_cat = jnp.pad(x_cat, ((0, M_pad - M), (0, 0)))

    plist = pack_params(params, N, D, H, C)

    in_specs = [pl.BlockSpec((tile_m, ND + C), lambda i: (i, 0))]
    in_specs += [pl.BlockSpec(p.shape, lambda i: (0, 0)) for p in plist]
    out_spec = pl.BlockSpec((tile_m, H + N), lambda i: (i, 0))
    out_shape = jax.ShapeDtypeStruct((M_pad, H + N), jnp.float32)

    kernel = functools.partial(_vsn_kernel, N, D, H)
    fused = pl.pallas_call(
        kernel,
        grid=grid,
        in_specs=in_specs,
        out_specs=out_spec,
        out_shape=out_shape,
        compiler_params=pltpu.CompilerParams(dimension_semantics=("parallel",)),
    )(x_cat, *plist)

    outputs = fused[:M, :H].reshape(B, T, H)
    weights = fused[:M, H:].reshape(B, T, N)
    return outputs, weights


# ----------------------------- pure-JAX reference -------------------------------

def vsn_reference(embedding, context, params):
    B, T, N, D = embedding.shape
    C = context.shape[-1]
    M = B * T
    flat = embedding.reshape(M, N * D).astype(jnp.float32)
    ctx = jnp.broadcast_to(context[:, None, :], (B, T, C)).reshape(M, C)

    logits = _grn(flat,
                  params["f_skip_w"], params["f_skip_b"],
                  params["f_fc1_w"], params["f_fc1_b"],
                  params["f_fc2_w"], params["f_fc2_b"],
                  params["f_glu_w"], params["f_glu_b"],
                  params["f_ln_g"], params["f_ln_b"],
                  ctx=ctx, ctx_w=params["f_ctx_w"])
    weights = jax.nn.softmax(logits, axis=-1)

    trans_list = []
    for n in range(N):
        x_n = flat[:, n * D:(n + 1) * D]
        trans_list.append(_grn(x_n,
                               params["v_skip_w"][n], params["v_skip_b"][n],
                               params["v_fc1_w"][n], params["v_fc1_b"][n],
                               params["v_fc2_w"][n], params["v_fc2_b"][n],
                               params["v_glu_w"][n], params["v_glu_b"][n],
                               params["v_ln_g"][n], params["v_ln_b"][n]))
    transformed = jnp.stack(trans_list, axis=1)            # (M, N, H)
    outputs = jnp.sum(weights[..., None] * transformed, axis=1)
    return outputs.reshape(B, T, -1), weights.reshape(B, T, N)


# ----------------------------- main ---------------------------------------------

if __name__ == "__main__":
    B, T, N, D, H, C = 2, 8, 4, 4, 32, 8   # batch, time, num_vars, input_dim, hidden, ctx

    key = jax.random.PRNGKey(0)
    k_emb, k_ctx, k_par = jax.random.split(key, 3)
    embedding = jax.random.normal(k_emb, (B, T, N, D), jnp.float32)
    context = jax.random.normal(k_ctx, (B, C), jnp.float32)
    params = init_params(k_par, N, D, H, C)

    outputs, weights = vsn_forward(embedding, context, params)
    jax.block_until_ready((outputs, weights))

    ref_out, ref_w = vsn_reference(embedding, context, params)
    # pl.reciprocal(approx=True) in the softmax slightly loosens the match.
    np.testing.assert_allclose(np.asarray(outputs), np.asarray(ref_out),
                               atol=5e-3, rtol=5e-3)
    np.testing.assert_allclose(np.asarray(weights), np.asarray(ref_w),
                               atol=5e-3, rtol=5e-3)

    print("KERNEL_OK")
</pallas_src>

<mosaic_0001>
module attributes {stable_mosaic.version = 11 : i64} {
  func.func @_vsn_kernel(%arg0: i32, %arg1: memref<8x24xf32, #tpu.memory_space<vmem>>, %arg2: memref<24x36xf32, #tpu.memory_space<vmem>>, %arg3: memref<1x36xf32, #tpu.memory_space<vmem>>, %arg4: memref<16x256xf32, #tpu.memory_space<vmem>>, %arg5: memref<1x256xf32, #tpu.memory_space<vmem>>, %arg6: memref<32x32xf32, #tpu.memory_space<vmem>>, %arg7: memref<1x32xf32, #tpu.memory_space<vmem>>, %arg8: memref<32x8xf32, #tpu.memory_space<vmem>>, %arg9: memref<1x8xf32, #tpu.memory_space<vmem>>, %arg10: memref<1x4xf32, #tpu.memory_space<vmem>>, %arg11: memref<1x4xf32, #tpu.memory_space<vmem>>, %arg12: memref<128x128xf32, #tpu.memory_space<vmem>>, %arg13: memref<1x128xf32, #tpu.memory_space<vmem>>, %arg14: memref<128x256xf32, #tpu.memory_space<vmem>>, %arg15: memref<1x256xf32, #tpu.memory_space<vmem>>, %arg16: memref<1x128xf32, #tpu.memory_space<vmem>>, %arg17: memref<1x128xf32, #tpu.memory_space<vmem>>, %arg18: memref<128x128xf32, #tpu.memory_space<vmem>>, %arg19: memref<4x128xf32, #tpu.memory_space<vmem>>, %arg20: memref<128x32xf32, #tpu.memory_space<vmem>>, %arg21: memref<8x36xf32, #tpu.memory_space<vmem>>) attributes {dimension_semantics = [#tpu.dimension_semantics<parallel>], iteration_bounds = array<i64: 2>, scalar_prefetch = 0 : i64, scratch_operands = 0 : i64, tpu.core_type = #tpu.core_type<tc>, window_params = [{transform_indices = @transform_0, window_bounds = array<i64: 8, 24>}, {pipeline_mode = #tpu.pipeline_mode<synchronous>, transform_indices = @transform_1, window_bounds = array<i64: 24, 36>}, {pipeline_mode = #tpu.pipeline_mode<synchronous>, transform_indices = @transform_2, window_bounds = array<i64: 1, 36>}, {pipeline_mode = #tpu.pipeline_mode<synchronous>, transform_indices = @transform_3, window_bounds = array<i64: 16, 256>}, {pipeline_mode = #tpu.pipeline_mode<synchronous>, transform_indices = @transform_4, window_bounds = array<i64: 1, 256>}, {pipeline_mode = #tpu.pipeline_mode<synchronous>, transform_indices = @transform_5, window_bounds = array<i64: 32, 32>}, {pipeline_mode = #tpu.pipeline_mode<synchronous>, transform_indices = @transform_6, window_bounds = array<i64: 1, 32>}, {pipeline_mode = #tpu.pipeline_mode<synchronous>, transform_indices = @transform_7, window_bounds = array<i64: 32, 8>}, {pipeline_mode = #tpu.pipeline_mode<synchronous>, transform_indices = @transform_8, window_bounds = array<i64: 1, 8>}, {pipeline_mode = #tpu.pipeline_mode<synchronous>, transform_indices = @transform_9, window_bounds = array<i64: 1, 4>}, {pipeline_mode = #tpu.pipeline_mode<synchronous>, transform_indices = @transform_10, window_bounds = array<i64: 1, 4>}, {pipeline_mode = #tpu.pipeline_mode<synchronous>, transform_indices = @transform_11, window_bounds = array<i64: 128, 128>}, {pipeline_mode = #tpu.pipeline_mode<synchronous>, transform_indices = @transform_12, window_bounds = array<i64: 1, 128>}, {pipeline_mode = #tpu.pipeline_mode<synchronous>, transform_indices = @transform_13, window_bounds = array<i64: 128, 256>}, {pipeline_mode = #tpu.pipeline_mode<synchronous>, transform_indices = @transform_14, window_bounds = array<i64: 1, 256>}, {pipeline_mode = #tpu.pipeline_mode<synchronous>, transform_indices = @transform_15, window_bounds = array<i64: 1, 128>}, {pipeline_mode = #tpu.pipeline_mode<synchronous>, transform_indices = @transform_16, window_bounds = array<i64: 1, 128>}, {pipeline_mode = #tpu.pipeline_mode<synchronous>, transform_indices = @transform_17, window_bounds = array<i64: 128, 128>}, {pipeline_mode = #tpu.pipeline_mode<synchronous>, transform_indices = @transform_18, window_bounds = array<i64: 4, 128>}, {pipeline_mode = #tpu.pipeline_mode<synchronous>, transform_indices = @transform_19, window_bounds = array<i64: 128, 32>}, {transform_indices = @transform_20, window_bounds = array<i64: 8, 36>}]} {
    %c0 = arith.constant 0 : index
    %c0_0 = arith.constant 0 : index
    %0 = vector.load %arg1[%c0, %c0_0] : memref<8x24xf32, #tpu.memory_space<vmem>>, vector<8x24xf32>
    %1 = vector.extract_strided_slice %0 {offsets = [0, 0], sizes = [8, 16], strides = [1, 1]} : vector<8x24xf32> to vector<8x16xf32>
    %c0_1 = arith.constant 0 : index
    %c0_2 = arith.constant 0 : index
    %2 = vector.load %arg2[%c0_1, %c0_2] : memref<24x36xf32, #tpu.memory_space<vmem>>, vector<24x36xf32>
    %cst = arith.constant dense<0.000000e+00> : vector<8x36xf32>
    %3 = tpu.matmul %0, %2, %cst {dimension_numbers = #tpu.dot_dimension_numbers<[1], [0], [0], [1], [0, 0, 1, 1], [], []>} : vector<8x24xf32>, vector<24x36xf32>, vector<8x36xf32> -> vector<8x36xf32>
    %c0_3 = arith.constant 0 : index
    %c0_4 = arith.constant 0 : index
    %4 = vector.load %arg3[%c0_3, %c0_4] : memref<1x36xf32, #tpu.memory_space<vmem>>, vector<1x36xf32>
    %5 = vector.broadcast %4 : vector<1x36xf32> to vector<8x36xf32>
    %6 = arith.addf %3, %5 : vector<8x36xf32>
    %7 = vector.extract_strided_slice %6 {offsets = [0, 0], sizes = [8, 32], strides = [1, 1]} : vector<8x36xf32> to vector<8x32xf32>
    %8 = vector.extract_strided_slice %6 {offsets = [0, 32], sizes = [8, 4], strides = [1, 1]} : vector<8x36xf32> to vector<8x4xf32>
    %c0_5 = arith.constant 0 : index
    %c0_6 = arith.constant 0 : index
    %9 = vector.load %arg4[%c0_5, %c0_6] : memref<16x256xf32, #tpu.memory_space<vmem>>, vector<16x256xf32>
    %cst_7 = arith.constant dense<0.000000e+00> : vector<8x256xf32>
    %10 = tpu.matmul %1, %9, %cst_7 {dimension_numbers = #tpu.dot_dimension_numbers<[1], [0], [0], [1], [0, 0, 1, 1], [], []>} : vector<8x16xf32>, vector<16x256xf32>, vector<8x256xf32> -> vector<8x256xf32>
    %c0_8 = arith.constant 0 : index
    %c0_9 = arith.constant 0 : index
    %11 = vector.load %arg5[%c0_8, %c0_9] : memref<1x256xf32, #tpu.memory_space<vmem>>, vector<1x256xf32>
    %12 = vector.broadcast %11 : vector<1x256xf32> to vector<8x256xf32>
    %13 = arith.addf %10, %12 : vector<8x256xf32>
    %14 = vector.extract_strided_slice %13 {offsets = [0, 0], sizes = [8, 128], strides = [1, 1]} : vector<8x256xf32> to vector<8x128xf32>
    %15 = vector.extract_strided_slice %13 {offsets = [0, 128], sizes = [8, 128], strides = [1, 1]} : vector<8x256xf32> to vector<8x128xf32>
    %cst_10 = arith.constant 0.000000e+00 : f32
    %16 = vector.broadcast %cst_10 : f32 to vector<8x32xf32>
    %17 = arith.cmpf ogt, %7, %16 : vector<8x32xf32>
    %18 = math.exp %7 : vector<8x32xf32>
    %cst_11 = arith.constant 1.000000e+00 : f32
    %19 = vector.broadcast %cst_11 : f32 to vector<8x32xf32>
    %20 = arith.subf %18, %19 : vector<8x32xf32>
    %21 = arith.select %17, %7, %20 : vector<8x32xi1>, vector<8x32xf32>
    %cst_12 = arith.constant 0.000000e+00 : f32
    %22 = vector.broadcast %cst_12 : f32 to vector<8x128xf32>
    %23 = arith.cmpf ogt, %14, %22 : vector<8x128xf32>
    %24 = math.exp %14 : vector<8x128xf32>
    %cst_13 = arith.constant 1.000000e+00 : f32
    %25 = vector.broadcast %cst_13 : f32 to vector<8x128xf32>
    %26 = arith.subf %24, %25 : vector<8x128xf32>
    %27 = arith.select %23, %14, %26 : vector<8x128xi1>, vector<8x128xf32>
    %c0_14 = arith.constant 0 : index
    %c0_15 = arith.constant 0 : index
    %28 = vector.load %arg6[%c0_14, %c0_15] : memref<32x32xf32, #tpu.memory_space<vmem>>, vector<32x32xf32>
    %cst_16 = arith.constant dense<0.000000e+00> : vector<8x32xf32>
    %29 = tpu.matmul %21, %28, %cst_16 {dimension_numbers = #tpu.dot_dimension_numbers<[1], [0], [0], [1], [0, 0, 1, 1], [], []>} : vector<8x32xf32>, vector<32x32xf32>, vector<8x32xf32> -> vector<8x32xf32>
    %c0_17 = arith.constant 0 : index
    %c0_18 = arith.constant 0 : index
    %30 = vector.load %arg7[%c0_17, %c0_18] : memref<1x32xf32, #tpu.memory_space<vmem>>, vector<1x32xf32>
    %31 = vector.broadcast %30 : vector<1x32xf32> to vector<8x32xf32>
    %32 = arith.addf %29, %31 : vector<8x32xf32>
    %c0_19 = arith.constant 0 : index
    %c0_20 = arith.constant 0 : index
    %33 = vector.load %arg12[%c0_19, %c0_20] : memref<128x128xf32, #tpu.memory_space<vmem>>, vector<128x128xf32>
    %cst_21 = arith.constant dense<0.000000e+00> : vector<8x128xf32>
    %34 = tpu.matmul %27, %33, %cst_21 {dimension_numbers = #tpu.dot_dimension_numbers<[1], [0], [0], [1], [0, 0, 1, 1], [], []>} : vector<8x128xf32>, vector<128x128xf32>, vector<8x128xf32> -> vector<8x128xf32>
    %c0_22 = arith.constant 0 : index
    %c0_23 = arith.constant 0 : index
    %35 = vector.load %arg13[%c0_22, %c0_23] : memref<1x128xf32, #tpu.memory_space<vmem>>, vector<1x128xf32>
    %36 = vector.broadcast %35 : vector<1x128xf32> to vector<8x128xf32>
    %37 = arith.addf %34, %36 : vector<8x128xf32>
    %c0_24 = arith.constant 0 : index
    %c0_25 = arith.constant 0 : index
    %38 = vector.load %arg8[%c0_24, %c0_25] : memref<32x8xf32, #tpu.memory_space<vmem>>, vector<32x8xf32>
    %cst_26 = arith.constant dense<0.000000e+00> : vector<8x8xf32>
    %39 = tpu.matmul %32, %38, %cst_26 {dimension_numbers = #tpu.dot_dimension_numbers<[1], [0], [0], [1], [0, 0, 1, 1], [], []>} : vector<8x32xf32>, vector<32x8xf32>, vector<8x8xf32> -> vector<8x8xf32>
    %c0_27 = arith.constant 0 : index
    %c0_28 = arith.constant 0 : index
    %40 = vector.load %arg9[%c0_27, %c0_28] : memref<1x8xf32, #tpu.memory_space<vmem>>, vector<1x8xf32>
    %41 = vector.broadcast %40 : vector<1x8xf32> to vector<8x8xf32>
    %42 = arith.addf %39, %41 : vector<8x8xf32>
    %43 = vector.extract_strided_slice %42 {offsets = [0, 0], sizes = [8, 4], strides = [1, 1]} : vector<8x8xf32> to vector<8x4xf32>
    %44 = vector.extract_strided_slice %42 {offsets = [0, 4], sizes = [8, 4], strides = [1, 1]} : vector<8x8xf32> to vector<8x4xf32>
    %cst_29 = arith.constant 0.000000e+00 : f32
    %45 = vector.broadcast %cst_29 : f32 to vector<8x4xf32>
    %46 = arith.subf %45, %44 : vector<8x4xf32>
    %47 = math.exp %46 : vector<8x4xf32>
    %cst_30 = arith.constant 1.000000e+00 : f32
    %48 = vector.broadcast %cst_30 : f32 to vector<8x4xf32>
    %49 = arith.addf %48, %47 : vector<8x4xf32>
    %cst_31 = arith.constant 1.000000e+00 : f32
    %50 = vector.broadcast %cst_31 : f32 to vector<8x4xf32>
    %51 = arith.divf %50, %49 : vector<8x4xf32>
    %52 = arith.mulf %43, %51 : vector<8x4xf32>
    %c0_32 = arith.constant 0 : index
    %c0_33 = arith.constant 0 : index
    %53 = vector.load %arg14[%c0_32, %c0_33] : memref<128x256xf32, #tpu.memory_space<vmem>>, vector<128x256xf32>
    %cst_34 = arith.constant dense<0.000000e+00> : vector<8x256xf32>
    %54 = tpu.matmul %37, %53, %cst_34 {dimension_numbers = #tpu.dot_dimension_numbers<[1], [0], [0], [1], [0, 0, 1, 1], [], []>} : vector<8x128xf32>, vector<128x256xf32>, vector<8x256xf32> -> vector<8x256xf32>
    %c0_35 = arith.constant 0 : index
    %c0_36 = arith.constant 0 : index
    %55 = vector.load %arg15[%c0_35, %c0_36] : memref<1x256xf32, #tpu.memory_space<vmem>>, vector<1x256xf32>
    %56 = vector.broadcast %55 : vector<1x256xf32> to vector<8x256xf32>
    %57 = arith.addf %54, %56 : vector<8x256xf32>
    %58 = vector.extract_strided_slice %57 {offsets = [0, 0], sizes = [8, 128], strides = [1, 1]} : vector<8x256xf32> to vector<8x128xf32>
    %59 = vector.extract_strided_slice %57 {offsets = [0, 128], sizes = [8, 128], strides = [1, 1]} : vector<8x256xf32> to vector<8x128xf32>
    %cst_37 = arith.constant 0.000000e+00 : f32
    %60 = vector.broadcast %cst_37 : f32 to vector<8x128xf32>
    %61 = arith.subf %60, %59 : vector<8x128xf32>
    %62 = math.exp %61 : vector<8x128xf32>
    %cst_38 = arith.constant 1.000000e+00 : f32
    %63 = vector.broadcast %cst_38 : f32 to vector<8x128xf32>
    %64 = arith.addf %63, %62 : vector<8x128xf32>
    %cst_39 = arith.constant 1.000000e+00 : f32
    %65 = vector.broadcast %cst_39 : f32 to vector<8x128xf32>
    %66 = arith.divf %65, %64 : vector<8x128xf32>
    %67 = arith.mulf %58, %66 : vector<8x128xf32>
    %68 = arith.addf %52, %8 : vector<8x4xf32>
    %cst_40 = arith.constant dense<0.000000e+00> : vector<8xf32>
    %69 = vector.multi_reduction <add>, %68, %cst_40 [1] : vector<8x4xf32> to vector<8xf32>
    %70 = vector.shape_cast %69 : vector<8xf32> to vector<8x1xf32>
    %cst_41 = arith.constant 4.000000e+00 : f32
    %71 = vector.broadcast %cst_41 : f32 to vector<8x1xf32>
    %72 = arith.divf %70, %71 : vector<8x1xf32>
    %73 = vector.broadcast %72 : vector<8x1xf32> to vector<8x4xf32>
    %74 = arith.subf %68, %73 : vector<8x4xf32>
    %75 = arith.mulf %74, %74 : vector<8x4xf32>
    %cst_42 = arith.constant dense<0.000000e+00> : vector<8xf32>
    %76 = vector.multi_reduction <add>, %75, %cst_42 [1] : vector<8x4xf32> to vector<8xf32>
    %77 = vector.shape_cast %76 : vector<8xf32> to vector<8x1xf32>
    %cst_43 = arith.constant 4.000000e+00 : f32
    %78 = vector.broadcast %cst_43 : f32 to vector<8x1xf32>
    %79 = arith.divf %77, %78 : vector<8x1xf32>
    %80 = vector.broadcast %72 : vector<8x1xf32> to vector<8x4xf32>
    %81 = arith.subf %68, %80 : vector<8x4xf32>
    %cst_44 = arith.constant 9.99999974E-6 : f32
    %82 = vector.broadcast %cst_44 : f32 to vector<8x1xf32>
    %83 = arith.addf %79, %82 : vector<8x1xf32>
    %84 = math.rsqrt %83 : vector<8x1xf32>
    %85 = vector.broadcast %84 : vector<8x1xf32> to vector<8x4xf32>
    %86 = arith.mulf %81, %85 : vector<8x4xf32>
    %c0_45 = arith.constant 0 : index
    %c0_46 = arith.constant 0 : index
    %87 = vector.load %arg10[%c0_45, %c0_46] : memref<1x4xf32, #tpu.memory_space<vmem>>, vector<1x4xf32>
    %88 = vector.broadcast %87 : vector<1x4xf32> to vector<8x4xf32>
    %89 = arith.mulf %86, %88 : vector<8x4xf32>
    %c0_47 = arith.constant 0 : index
    %c0_48 = arith.constant 0 : index
    %90 = vector.load %arg11[%c0_47, %c0_48] : memref<1x4xf32, #tpu.memory_space<vmem>>, vector<1x4xf32>
    %91 = vector.broadcast %90 : vector<1x4xf32> to vector<8x4xf32>
    %92 = arith.addf %89, %91 : vector<8x4xf32>
    %cst_49 = arith.constant dense<0xFF800000> : vector<8xf32>
    %93 = vector.multi_reduction <maximumf>, %92, %cst_49 [1] : vector<8x4xf32> to vector<8xf32>
    %94 = vector.shape_cast %93 : vector<8xf32> to vector<8x1xf32>
    %95 = vector.broadcast %94 : vector<8x1xf32> to vector<8x4xf32>
    %96 = arith.subf %92, %95 : vector<8x4xf32>
    %97 = math.exp %96 : vector<8x4xf32>
    %cst_50 = arith.constant dense<0.000000e+00> : vector<8xf32>
    %98 = vector.multi_reduction <add>, %97, %cst_50 [1] : vector<8x4xf32> to vector<8xf32>
    %99 = vector.shape_cast %98 : vector<8xf32> to vector<8x1xf32>
    %100 = tpu.reciprocal %99 {approx = true} : vector<8x1xf32> -> vector<8x1xf32>
    %101 = vector.broadcast %100 : vector<8x1xf32> to vector<8x4xf32>
    %102 = arith.mulf %97, %101 : vector<8x4xf32>
    %103 = arith.addf %67, %15 : vector<8x128xf32>
    %c0_51 = arith.constant 0 : index
    %c0_52 = arith.constant 0 : index
    %104 = vector.load %arg18[%c0_51, %c0_52] : memref<128x128xf32, #tpu.memory_space<vmem>>, vector<128x128xf32>
    %cst_53 = arith.constant dense<0.000000e+00> : vector<8x128xf32>
    %105 = tpu.matmul %103, %104, %cst_53 {dimension_numbers = #tpu.dot_dimension_numbers<[1], [0], [0], [1], [0, 0, 1, 1], [], []>} : vector<8x128xf32>, vector<128x128xf32>, vector<8x128xf32> -> vector<8x128xf32>
    %106 = arith.subf %103, %105 : vector<8x128xf32>
    %107 = arith.mulf %106, %106 : vector<8x128xf32>
    %c0_54 = arith.constant 0 : index
    %c0_55 = arith.constant 0 : index
    %108 = vector.load %arg18[%c0_54, %c0_55] : memref<128x128xf32, #tpu.memory_space<vmem>>, vector<128x128xf32>
    %cst_56 = arith.constant dense<0.000000e+00> : vector<8x128xf32>
    %109 = tpu.matmul %107, %108, %cst_56 {dimension_numbers = #tpu.dot_dimension_numbers<[1], [0], [0], [1], [0, 0, 1, 1], [], []>} : vector<8x128xf32>, vector<128x128xf32>, vector<8x128xf32> -> vector<8x128xf32>
    %cst_57 = arith.constant 9.99999974E-6 : f32
    %110 = vector.broadcast %cst_57 : f32 to vector<8x128xf32>
    %111 = arith.addf %109, %110 : vector<8x128xf32>
    %112 = math.rsqrt %111 : vector<8x128xf32>
    %113 = arith.mulf %106, %112 : vector<8x128xf32>
    %c0_58 = arith.constant 0 : index
    %c0_59 = arith.constant 0 : index
    %114 = vector.load %arg16[%c0_58, %c0_59] : memref<1x128xf32, #tpu.memory_space<vmem>>, vector<1x128xf32>
    %115 = vector.broadcast %114 : vector<1x128xf32> to vector<8x128xf32>
    %116 = arith.mulf %113, %115 : vector<8x128xf32>
    %c0_60 = arith.constant 0 : index
    %c0_61 = arith.constant 0 : index
    %117 = vector.load %arg17[%c0_60, %c0_61] : memref<1x128xf32, #tpu.memory_space<vmem>>, vector<1x128xf32>
    %118 = vector.broadcast %117 : vector<1x128xf32> to vector<8x128xf32>
    %119 = arith.addf %116, %118 : vector<8x128xf32>
    %c0_62 = arith.constant 0 : index
    %c0_63 = arith.constant 0 : index
    %120 = vector.load %arg19[%c0_62, %c0_63] : memref<4x128xf32, #tpu.memory_space<vmem>>, vector<4x128xf32>
    %cst_64 = arith.constant dense<0.000000e+00> : vector<8x128xf32>
    %121 = tpu.matmul %102, %120, %cst_64 {dimension_numbers = #tpu.dot_dimension_numbers<[1], [0], [0], [1], [0, 0, 1, 1], [], []>} : vector<8x4xf32>, vector<4x128xf32>, vector<8x128xf32> -> vector<8x128xf32>
    %122 = arith.mulf %119, %121 : vector<8x128xf32>
    %c0_65 = arith.constant 0 : index
    %c0_66 = arith.constant 0 : index
    %123 = vector.load %arg20[%c0_65, %c0_66] : memref<128x32xf32, #tpu.memory_space<vmem>>, vector<128x32xf32>
    %cst_67 = arith.constant dense<0.000000e+00> : vector<8x32xf32>
    %124 = tpu.matmul %122, %123, %cst_67 {dimension_numbers = #tpu.dot_dimension_numbers<[1], [0], [0], [1], [0, 0, 1, 1], [], []>} : vector<8x128xf32>, vector<128x32xf32>, vector<8x32xf32> -> vector<8x32xf32>
    %125 = tpu.concatenate %124, %102 in 1 : vector<8x32xf32>, vector<8x4xf32> -> vector<8x36xf32>
    %c0_68 = arith.constant 0 : index
    %c0_69 = arith.constant 0 : index
    %126 = vector.load %arg21[%c0_68, %c0_69] : memref<8x36xf32, #tpu.memory_space<vmem>>, vector<8x36xf32>
    tpu.vector_store %arg21[%c0_68, %c0_69], %125 {strides = array<i32>} : memref<8x36xf32, #tpu.memory_space<vmem>>, vector<8x36xf32>,
    return
  }
  func.func @transform_0(%arg0: i32) -> (i32, i32) {
    %c0_i32 = arith.constant 0 : i32
    %c0_i32_0 = arith.constant 0 : i32
    return %arg0, %c0_i32 : i32, i32
  }
  func.func @transform_1(%arg0: i32) -> (i32, i32) {
    %c0_i32 = arith.constant 0 : i32
    %c0_i32_0 = arith.constant 0 : i32
    %c0_i32_1 = arith.constant 0 : i32
    return %c0_i32, %c0_i32_0 : i32, i32
  }
  func.func @transform_2(%arg0: i32) -> (i32, i32) {
    %c0_i32 = arith.constant 0 : i32
    %c0_i32_0 = arith.constant 0 : i32
    %c0_i32_1 = arith.constant 0 : i32
    return %c0_i32, %c0_i32_0 : i32, i32
  }
  func.func @transform_3(%arg0: i32) -> (i32, i32) {
    %c0_i32 = arith.constant 0 : i32
    %c0_i32_0 = arith.constant 0 : i32
    %c0_i32_1 = arith.constant 0 : i32
    return %c0_i32, %c0_i32_0 : i32, i32
  }
  func.func @transform_4(%arg0: i32) -> (i32, i32) {
    %c0_i32 = arith.constant 0 : i32
    %c0_i32_0 = arith.constant 0 : i32
    %c0_i32_1 = arith.constant 0 : i32
    return %c0_i32, %c0_i32_0 : i32, i32
  }
  func.func @transform_5(%arg0: i32) -> (i32, i32) {
    %c0_i32 = arith.constant 0 : i32
    %c0_i32_0 = arith.constant 0 : i32
    %c0_i32_1 = arith.constant 0 : i32
    return %c0_i32, %c0_i32_0 : i32, i32
  }
  func.func @transform_6(%arg0: i32) -> (i32, i32) {
    %c0_i32 = arith.constant 0 : i32
    %c0_i32_0 = arith.constant 0 : i32
    %c0_i32_1 = arith.constant 0 : i32
    return %c0_i32, %c0_i32_0 : i32, i32
  }
  func.func @transform_7(%arg0: i32) -> (i32, i32) {
    %c0_i32 = arith.constant 0 : i32
    %c0_i32_0 = arith.constant 0 : i32
    %c0_i32_1 = arith.constant 0 : i32
    return %c0_i32, %c0_i32_0 : i32, i32
  }
  func.func @transform_8(%arg0: i32) -> (i32, i32) {
    %c0_i32 = arith.constant 0 : i32
    %c0_i32_0 = arith.constant 0 : i32
    %c0_i32_1 = arith.constant 0 : i32
    return %c0_i32, %c0_i32_0 : i32, i32
  }
  func.func @transform_9(%arg0: i32) -> (i32, i32) {
    %c0_i32 = arith.constant 0 : i32
    %c0_i32_0 = arith.constant 0 : i32
    %c0_i32_1 = arith.constant 0 : i32
    return %c0_i32, %c0_i32_0 : i32, i32
  }
  func.func @transform_10(%arg0: i32) -> (i32, i32) {
    %c0_i32 = arith.constant 0 : i32
    %c0_i32_0 = arith.constant 0 : i32
    %c0_i32_1 = arith.constant 0 : i32
    return %c0_i32, %c0_i32_0 : i32, i32
  }
  func.func @transform_11(%arg0: i32) -> (i32, i32) {
    %c0_i32 = arith.constant 0 : i32
    %c0_i32_0 = arith.constant 0 : i32
    %c0_i32_1 = arith.constant 0 : i32
    return %c0_i32, %c0_i32_0 : i32, i32
  }
  func.func @transform_12(%arg0: i32) -> (i32, i32) {
    %c0_i32 = arith.constant 0 : i32
    %c0_i32_0 = arith.constant 0 : i32
    %c0_i32_1 = arith.constant 0 : i32
    return %c0_i32, %c0_i32_0 : i32, i32
  }
  func.func @transform_13(%arg0: i32) -> (i32, i32) {
    %c0_i32 = arith.constant 0 : i32
    %c0_i32_0 = arith.constant 0 : i32
    %c0_i32_1 = arith.constant 0 : i32
    return %c0_i32, %c0_i32_0 : i32, i32
  }
  func.func @transform_14(%arg0: i32) -> (i32, i32) {
    %c0_i32 = arith.constant 0 : i32
    %c0_i32_0 = arith.constant 0 : i32
    %c0_i32_1 = arith.constant 0 : i32
    return %c0_i32, %c0_i32_0 : i32, i32
  }
  func.func @transform_15(%arg0: i32) -> (i32, i32) {
    %c0_i32 = arith.constant 0 : i32
    %c0_i32_0 = arith.constant 0 : i32
    %c0_i32_1 = arith.constant 0 : i32
    return %c0_i32, %c0_i32_0 : i32, i32
  }
  func.func @transform_16(%arg0: i32) -> (i32, i32) {
    %c0_i32 = arith.constant 0 : i32
    %c0_i32_0 = arith.constant 0 : i32
    %c0_i32_1 = arith.constant 0 : i32
    return %c0_i32, %c0_i32_0 : i32, i32
  }
  func.func @transform_17(%arg0: i32) -> (i32, i32) {
    %c0_i32 = arith.constant 0 : i32
    %c0_i32_0 = arith.constant 0 : i32
    %c0_i32_1 = arith.constant 0 : i32
    return %c0_i32, %c0_i32_0 : i32, i32
  }
  func.func @transform_18(%arg0: i32) -> (i32, i32) {
    %c0_i32 = arith.constant 0 : i32
    %c0_i32_0 = arith.constant 0 : i32
    %c0_i32_1 = arith.constant 0 : i32
    return %c0_i32, %c0_i32_0 : i32, i32
  }
  func.func @transform_19(%arg0: i32) -> (i32, i32) {
    %c0_i32 = arith.constant 0 : i32
    %c0_i32_0 = arith.constant 0 : i32
    %c0_i32_1 = arith.constant 0 : i32
    return %c0_i32, %c0_i32_0 : i32, i32
  }
  func.func @transform_20(%arg0: i32) -> (i32, i32) {
    %c0_i32 = arith.constant 0 : i32
    %c0_i32_0 = arith.constant 0 : i32
    return %arg0, %c0_i32 : i32, i32
  }
}

</mosaic_0001>

<bundles_post_ra>
// kernel: tpu_custom_call.1
= control target key start
LH: loop header
LB: loop body
LE: loop exit
PB: predicated region body
PF: predicated region fallthrough
CT: control target
= control target key end

     0   :  { %s4094_s0 = inlined_call_operand.hbm [shape: f32[16,24], index: 0, kind: input, shape index: {}]   ;;  %s4095_s1 = inlined_call_operand.hbm [shape: f32[24,36], index: 1, kind: input, shape index: {}]   ;;  %s4096_s2 = inlined_call_operand.hbm [shape: f32[1,36], index: 2, kind: input, shape index: {}]   ;;  %s4097_s3 = inlined_call_operand.hbm [shape: f32[16,256], index: 3, kind: input, shape index: {}]   ;;  %s4098_s4 = inlined_call_operand.hbm [shape: f32[1,256], index: 4, kind: input, shape index: {}]   ;;  %s4099_s5 = inlined_call_operand.hbm [shape: f32[32,32], index: 5, kind: input, shape index: {}]   ;;  %s4100_s6 = inlined_call_operand.hbm [shape: f32[1,32], index: 6, kind: input, shape index: {}]   ;;  %s4101_s7 = inlined_call_operand.vmem [shape: f32[32,8], index: 7, kind: input, shape index: {}]   ;;  %s4102_s8 = inlined_call_operand.hbm [shape: f32[1,8], index: 8, kind: input, shape index: {}]   ;;  %s4103_s9 = inlined_call_operand.hbm [shape: f32[1,4], index: 9, kind: input, shape index: {}]   ;;  %s4104_s10 = inlined_call_operand.hbm [shape: f32[1,4], index: 10, kind: input, shape index: {}]   ;;  %s4105_s11 = inlined_call_operand.vmem [shape: f32[128,128], index: 11, kind: input, shape index: {}]   ;;  %s4106_s12 = inlined_call_operand.hbm [shape: f32[1,128], index: 12, kind: input, shape index: {}]   ;;  %s4107_s13 = inlined_call_operand.hbm [shape: f32[128,256], index: 13, kind: input, shape index: {}]   ;;  %s4108_s14 = inlined_call_operand.hbm [shape: f32[1,256], index: 14, kind: input, shape index: {}]   ;;  %s4109_s15 = inlined_call_operand.hbm [shape: f32[1,128], index: 15, kind: input, shape index: {}]   ;;  %s4110_s16 = inlined_call_operand.hbm [shape: f32[1,128], index: 16, kind: input, shape index: {}]   ;;  %s4111_s17 = inlined_call_operand.vmem [shape: f32[128,128], index: 17, kind: input, shape index: {}]   ;;  %s4112_s18 = inlined_call_operand.vmem [shape: f32[4,128], index: 18, kind: input, shape index: {}]   ;;  %s4113_s19 = inlined_call_operand.vmem [shape: f32[128,32], index: 19, kind: input, shape index: {}]   ;;  %s4114_s20 = inlined_call_operand.hbm [shape: f32[16,36], index: 20, kind: output, shape index: {}]  }
   0x1   :  { %4139 = sst [smem:[#allocation39_spill]] %s4094_s0 }
   0x2   :  { %4140 = sst [smem:[#allocation40_spill]] %s4095_s1 }
   0x3   :  { %4141 = sst [smem:[#allocation41_spill]] %s4096_s2 }
   0x4   :  { %4142 = sst [smem:[#allocation42_spill]] %s4097_s3 }
   0x5   :  { %4143 = sst [smem:[#allocation43_spill]] %s4098_s4 }
   0x6   :  { %4144 = sst [smem:[#allocation44_spill]] %s4099_s5 }
   0x7   :  { %4145 = sst [smem:[#allocation45_spill]] %s4100_s6 }
   0x8   :  { %4146 = sst [smem:[#allocation46_spill]] %s4101_s7 }
   0x9   :  { %4147 = sst [smem:[#allocation47_spill]] %s4102_s8 }
   0xa   :  { %4148 = sst [smem:[#allocation48_spill]] %s4103_s9 }
   0xb   :  { %4149 = sst [smem:[#allocation49_spill]] %s4104_s10 }
   0xc   :  { %4150 = sst [smem:[#allocation50_spill]] %s4105_s11 }
   0xd   :  { %4151 = sst [smem:[#allocation51_spill]] %s4111_s17 }
   0xe   :  { %4152 = sst [smem:[#allocation52_spill]] %s4112_s18 }
   0xf   :  { %4153 = sst [smem:[#allocation53_spill]] %s4113_s19 }
  0x10   :  { %4154 = sst [smem:[#allocation54_spill]] %s4114_s20 }
  0x11   :  { %25 = vsyncpa [#allocation3], 0 }
  0x12   :  { %27 = vsyncpa [#allocation3 + $0x1], 0 }
  0x13   :  { %28 = vsyncpa [#allocation6], 0 }
  0x14   :  { %29 = vsyncpa [#allocation9], 0 }
  0x15   :  { %30 = vsyncpa [#allocation12], 0 }
  0x16   :  { %31 = vsyncpa [#allocation15], 0 }
  0x17   :  { %32 = vsyncpa [#allocation18], 0 }
  0x18   :  { %33 = vsyncpa [#allocation21], 0 }
  0x19   :  { %34 = vsyncpa [#allocation24], 0 }
  0x1a   :  { %35 = vsyncpa [#allocation4], 0 }
  0x1b   :  { %37 = vsyncpa [#allocation4 + $0x1], 0  ;;  %s3349_s1 = smov 0   ;;  %s3351_s22 = smov 0  }
  0x1c   :  { %s3353_s23 = smov 0   ;;  %s3355_s24 = smov 0  }
  0x1d LB: > { %4155 = sst [smem:[#allocation36_spill]] %s3204_s1  ;;  %s3218_s2 = smov [#allocation5]   ;;  %s3216_s24 = sphi %s3355_s24, %s4214_s24   ;;  %s3212_s23 = sphi %s3353_s23, %s4213_s23   ;;  %s3208_s22 = sphi %s3351_s22, %s4212_s22   ;;  %s3204_s1 = sphi %s3349_s1, %s4211_s1  }
  0x1e   : > { %s511_s25 = sshll.u32 %s3218_s2, 4  ;;  %s3370_s3 = sadd.s32 4294967295, %s3216_s24   ;;  %s3375_s25 = int_to_ptr.vmem [resolvable:$true] %s511_s25 }
  0x1f   : > { %4156 = sst [smem:[#allocation37_spill]] %s3370_s3  ;;  %p2021_p0 = scmp.ge.s32.totalorder %s3216_s24, 1 }
  0x20   : > { %p4130_p1 = scmp.eq.s32.totalorder %s3370_s3, 0  ;;  %p499_p2 = scmp.lt.s32.totalorder %s3216_s24, 3 }
  0x21   : > { %s3219_s27 = smov [#allocation8]   ;;  %s3220_s29 = smov [#allocation11]  }
  0x22   : > { %p3377_p3 = pnand %p2021_p0, %p499_p2  ;;  %s535_s28 = sshll.u32 %s3219_s27, 4  ;;  %s3390_s28 = int_to_ptr.vmem [resolvable:$true] %s535_s28 }
  0x23   : > { %s3392_s30 = sshll.u32 %s3220_s29, 4  ;;  %s4160_s2 = sld [smem:[#allocation40_spill]]  ;;  %s560_s30 = int_to_ptr.vmem [resolvable:$true] %s3392_s30 }
  0x24   : > { %s4157_s26 = scalar_select %p3377_p3, 1, 0 }
  0x25   : > { %p2543_p5 = pneg %p3377_p3 }
  0x26   : > { %4158 = sst [smem:[#allocation38_spill]] %s4157_s26 }
  0x27   : > { %p3386_p6 = pnand %p2543_p5, %p4130_p1 }
  0x29   : > { %s2700_s20 = scalar_lea.hbm %s4160_s2, 384  ;;  %p3402_p8 = pneg %p3386_p6 }
  0x2a   : > { %p2701_p7 = scmp.ne.s32.totalorder %s4160_s2, %s2700_s20  ;;  %p2707_p11 = scmp.lt.u32.totalorder %s2700_s20, %s4160_s2 }
  0x2c   : > { %p2703_p9 = pnand %p3402_p8, %p2701_p7 }
  0x2e   : > { %p2704_p10 = pneg %p2703_p9 }
  0x30   : > { %p2709_p12 = pnand %p2707_p11, %p2704_p10 }
  0x32   : > { %2712 = shalt.err (!%p2709_p12)
}
  0x33   : > { %s2713_s18 = scalar_lea.vmem %s3375_s25, 384  ;;  %p2721_p5 = scmp.lt.s32.totalorder %s3375_s25, %s3375_s25 }
  0x34   : > { %p2714_p13 = scmp.ne.s32.totalorder %s3375_s25, %s2713_s18  ;;  %p2722_p4 = scmp.lt.s32.totalorder %s2713_s18, %s2713_s18 }
  0x36   : > { %p2716_p0 = pnand %p2714_p13, %p3402_p8  ;;  %p2723_p7 = por %p2722_p4, %p2721_p5 }
  0x38   : > { %p2717_p2 = pneg %p2716_p0 }
  0x3a   : > { %p2724_p9 = pnand %p2723_p7, %p2717_p2 }
  0x3c   : > { %2727 = shalt.err (!%p2724_p9)
}
  0x3d   : > { %s4129_s19 = smov 128   ;;  %s3222_s17 = smov 8  }
  0x3e   : > { %2546 = dma.hbm_to_vmem [thread:$0]  (!%p3386_p6), %s4160_s2, 384, %s3375_s25, [#allocation6], %s4129_s19, %s4129_s19, %s3222_s17  }
  0x3f   : > { %s4162_s7 = sld [smem:[#allocation42_spill]] }
  0x45   : > { %s2728_s18 = scalar_lea.hbm %s4162_s7, 512 }
  0x46   : > { %p2729_p4 = scmp.ne.s32.totalorder %s4162_s7, %s2728_s18  ;;  %p2735_p12 = scmp.lt.u32.totalorder %s2728_s18, %s4162_s7 }
  0x48   : > { %p2731_p10 = pnand %p2729_p4, %p3402_p8 }
  0x4a   : > { %p2732_p11 = pneg %p2731_p10 }
  0x4c   : > { %p2737_p13 = pnand %p2735_p12, %p2732_p11 }
  0x4e   : > { %2740 = shalt.err (!%p2737_p13)
}
  0x4f   : > { %s2741_s25 = scalar_lea.vmem %s3390_s28, 512  ;;  %p2749_p7 = scmp.lt.s32.totalorder %s3390_s28, %s3390_s28 }
  0x50   : > { %p2742_p0 = scmp.ne.s32.totalorder %s3390_s28, %s2741_s25  ;;  %p2750_p9 = scmp.lt.s32.totalorder %s2741_s25, %s2741_s25 }
  0x52   : > { %p2744_p2 = pnand %p2742_p0, %p3402_p8  ;;  %p2751_p4 = por %p2750_p9, %p2749_p7 }
  0x54   : > { %p2745_p5 = pneg %p2744_p2 }
  0x56   : > { %p2752_p10 = pnand %p2751_p4, %p2745_p5 }
  0x58   : > { %2755 = shalt.err (!%p2752_p10)
}
  0x59   : > { %s4132_s11 = smov 256   ;;  %s4133_s1 = smov 16  }
  0x5a   : > { %2552 = dma.hbm_to_vmem [thread:$0]  (!%p3386_p6), %s4162_s7, 512, %s3390_s28, [#allocation9], %s4132_s11, %s4132_s11, %s4133_s1  }
  0x5b   : > { %s4163_s5 = sld [smem:[#allocation44_spill]] }
  0x61   : > { %s2756_s21 = scalar_lea.hbm %s4163_s5, 512 }
  0x62   : > { %p2757_p11 = scmp.ne.s32.totalorder %s4163_s5, %s2756_s21  ;;  %p2763_p0 = scmp.lt.u32.totalorder %s2756_s21, %s4163_s5 }
  0x64   : > { %p2759_p12 = pnand %p2757_p11, %p3402_p8 }
  0x66   : > { %p2760_p13 = pneg %p2759_p12 }
  0x68   : > { %p2765_p2 = pnand %p2763_p0, %p2760_p13 }
  0x6a   : > { %2768 = shalt.err (!%p2765_p2)
}
  0x6b   : > { %s2769_s3 = scalar_lea.vmem %s560_s30, 512  ;;  %p2777_p4 = scmp.lt.s32.totalorder %s560_s30, %s560_s30 }
  0x6c   : > { %p2770_p5 = scmp.ne.s32.totalorder %s560_s30, %s2769_s3  ;;  %p2778_p10 = scmp.lt.s32.totalorder %s2769_s3, %s2769_s3 }
  0x6e   : > { %p2772_p7 = pnand %p2770_p5, %p3402_p8  ;;  %p2779_p1 = por %p2778_p10, %p2777_p4 }
  0x70   : > { %p2773_p9 = pneg %p2772_p7 }
  0x72   : > { %p2780_p3 = pnand %p2779_p1, %p2773_p9 }
  0x74   : > { %2783 = shalt.err (!%p2780_p3)
}
  0x75   : > { %s4164_s28 = smov 128   ;;  %s3225_s20 = smov [#allocation14]  }
  0x76   : > { %2558 = dma.hbm_to_vmem [thread:$0]  (!%p3386_p6), %s4163_s5, 512, %s560_s30, [#allocation12], %s4164_s28, %s4164_s28, %s3222_s17  }
  0x77   : > { %s587_s0 = sshll.u32 %s3225_s20, 4  ;;  %s3226_s21 = smov [#allocation17]   ;;  %s588_s0 = int_to_ptr.vmem [resolvable:$true] %s587_s0 }
  0x78   : > { %s609_s29 = sshll.u32 %s3226_s21, 4  ;;  %s4165_s8 = sld [smem:[#allocation47_spill]]  ;;  %s610_s29 = int_to_ptr.vmem [resolvable:$true] %s609_s29 }
  0x7e   : > { %s2784_s3 = scalar_lea.hbm %s4165_s8, 16 }
  0x7f   : > { %p2785_p1 = scmp.ne.s32.totalorder %s4165_s8, %s2784_s3  ;;  %p2791_p12 = scmp.lt.u32.totalorder %s2784_s3, %s4165_s8 }
  0x81   : > { %p2787_p3 = pnand %p2785_p1, %p3402_p8 }
  0x83   : > { %p2788_p11 = pneg %p2787_p3 }
  0x85   : > { %p2793_p13 = pnand %p2791_p12, %p2788_p11 }
  0x87   : > { %2796 = shalt.err (!%p2793_p13)
}
  0x88   : > { %s2797_s30 = scalar_lea.vmem %s588_s0, 16  ;;  %s2804_s17 = scalar_lea.vmem %s588_s0, 32 }
  0x89   : > { %p2798_p0 = scmp.ne.s32.totalorder %s588_s0, %s2797_s30  ;;  %p2805_p7 = scmp.lt.s32.totalorder %s588_s0, %s588_s0 }
  0x8a   : > { %p2806_p9 = scmp.lt.s32.totalorder %s2804_s17, %s2797_s30 }
  0x8b   : > { %p2800_p2 = pnand %p2798_p0, %p3402_p8 }
  0x8c   : > { %p2807_p4 = por %p2806_p9, %p2805_p7 }
  0x8d   : > { %p2801_p5 = pneg %p2800_p2 }
  0x8f   : > { %p2808_p10 = pnand %p2807_p4, %p2801_p5 }
  0x91   : > { %2811 = shalt.err (!%p2808_p10)
}
  0x92   : > { %2564 = dma.hbm_to_vmem [thread:$0]  (!%p3386_p6), %s4165_s8, 16, %s588_s0, [#allocation15]  }
  0x93   : > { %s4166_s10 = sld [smem:[#allocation49_spill]] }
  0x99   : > { %s2812_s26 = scalar_lea.hbm %s4166_s10, 16 }
  0x9a   : > { %p2813_p1 = scmp.ne.s32.totalorder %s4166_s10, %s2812_s26  ;;  %p2819_p12 = scmp.lt.u32.totalorder %s2812_s26, %s4166_s10 }
  0x9c   : > { %p2815_p3 = pnand %p2813_p1, %p3402_p8 }
  0x9e   : > { %p2816_p11 = pneg %p2815_p3 }
  0xa0   : > { %p2821_p13 = pnand %p2819_p12, %p2816_p11 }
  0xa2   : > { %2824 = shalt.err (!%p2821_p13)
}
  0xa3   : > { %s2825_s3 = scalar_lea.vmem %s610_s29, 16  ;;  %s2832_s0 = scalar_lea.vmem %s610_s29, 32 }
  0xa4   : > { %p2826_p0 = scmp.ne.s32.totalorder %s610_s29, %s2825_s3  ;;  %p2833_p7 = scmp.lt.s32.totalorder %s610_s29, %s610_s29 }
  0xa5   : > { %p2834_p9 = scmp.lt.s32.totalorder %s2832_s0, %s2825_s3 }
  0xa6   : > { %p2828_p2 = pnand %p2826_p0, %p3402_p8 }
  0xa7   : > { %p2835_p4 = por %p2834_p9, %p2833_p7 }
  0xa8   : > { %p2829_p5 = pneg %p2828_p2 }
  0xaa   : > { %p2836_p10 = pnand %p2835_p4, %p2829_p5 }
  0xac   : > { %2839 = shalt.err (!%p2836_p10)
}
  0xad   : > { %2570 = dma.hbm_to_vmem [thread:$0]  (!%p3386_p6), %s4166_s10, 16, %s610_s29, [#allocation18]  }
  0xae   : > { %s3227_s17 = smov [#allocation20]   ;;  %s3228_s1 = smov [#allocation23]  }
  0xaf   : > { %s633_s11 = sshll.u32 %s3227_s17, 4  ;;  %s658_s2 = sshll.u32 %s3228_s1, 4  ;;  %s634_s11 = int_to_ptr.vmem [resolvable:$true] %s633_s11  ;;  %s659_s2 = int_to_ptr.vmem [resolvable:$true] %s658_s2 }
  0xb0   : > { %s2840_s20 = scalar_lea.hbm %s4107_s13, 4096 }
  0xb1   : > { %p2841_p1 = scmp.ne.s32.totalorder %s4107_s13, %s2840_s20  ;;  %p2847_p12 = scmp.lt.u32.totalorder %s2840_s20, %s4107_s13 }
  0xb3   : > { %p2843_p3 = pnand %p2841_p1, %p3402_p8 }
  0xb5   : > { %p2844_p11 = pneg %p2843_p3 }
  0xb7   : > { %p2849_p13 = pnand %p2847_p12, %p2844_p11 }
  0xb9   : > { %2852 = shalt.err (!%p2849_p13)
}
  0xba   : > { %s2853_s29 = scalar_lea.vmem %s634_s11, 4096  ;;  %p2861_p7 = scmp.lt.s32.totalorder %s634_s11, %s634_s11 }
  0xbb   : > { %p2854_p0 = scmp.ne.s32.totalorder %s634_s11, %s2853_s29  ;;  %p2862_p9 = scmp.lt.s32.totalorder %s2853_s29, %s2853_s29 }
  0xbd   : > { %p2856_p2 = pnand %p2854_p0, %p3402_p8  ;;  %p2863_p4 = por %p2862_p9, %p2861_p7 }
  0xbf   : > { %p2857_p5 = pneg %p2856_p2 }
  0xc1   : > { %p2864_p10 = pnand %p2863_p4, %p2857_p5 }
  0xc3   : > { %2867 = shalt.err (!%p2864_p10)
}
  0xc4   : > { %s4167_s0 = smov 16   ;;  %s4168_s19 = smov 256  }
  0xc5   : > { %2576 = dma.hbm_to_vmem [thread:$0]  (!%p3386_p6), %s4107_s13, 4096, %s634_s11, [#allocation21], %s4168_s19, %s4168_s19, %s4167_s0  }
  0xc6   : > { %s2868_s26 = scalar_lea.hbm %s4109_s15, 16 }
  0xc7   : > { %p2869_p1 = scmp.ne.s32.totalorder %s4109_s15, %s2868_s26  ;;  %p2875_p12 = scmp.lt.u32.totalorder %s2868_s26, %s4109_s15 }
  0xc9   : > { %p2871_p3 = pnand %p2869_p1, %p3402_p8 }
  0xcb   : > { %p2872_p11 = pneg %p2871_p3 }
  0xcd   : > { %p2877_p13 = pnand %p2875_p12, %p2872_p11 }
  0xcf   : > { %2880 = shalt.err (!%p2877_p13)
}
  0xd0   : > { %s2881_s3 = scalar_lea.vmem %s659_s2, 16  ;;  %s2888_s11 = scalar_lea.vmem %s659_s2, 32 }
  0xd1   : > { %p2882_p0 = scmp.ne.s32.totalorder %s659_s2, %s2881_s3  ;;  %p2889_p7 = scmp.lt.s32.totalorder %s659_s2, %s659_s2 }
  0xd2   : > { %p2890_p9 = scmp.lt.s32.totalorder %s2888_s11, %s2881_s3 }
  0xd3   : > { %p2884_p2 = pnand %p2882_p0, %p3402_p8 }
  0xd4   : > { %p2891_p4 = por %p2890_p9, %p2889_p7 }
  0xd5   : > { %p2885_p5 = pneg %p2884_p2 }
  0xd7   : > { %p2892_p10 = pnand %p2891_p4, %p2885_p5 }
  0xd9   : > { %2895 = shalt.err (!%p2892_p10)
}
  0xda   : > { %2582 = dma.hbm_to_vmem [thread:$0]  (!%p3386_p6), %s4109_s15, 16, %s659_s2, [#allocation24]  }
  0xdb   : > { %s3229_s19 = smov [#allocation7]   ;;  %s3230_s17 = smov [#allocation10]  }
  0xdc   : > { %s525_s30 = sshll.u32 %s3229_s19, 4  ;;  %s549_s1 = sshll.u32 %s3230_s17, 4  ;;  %s526_s30 = int_to_ptr.vmem [resolvable:$true] %s525_s30  ;;  %s550_s1 = int_to_ptr.vmem [resolvable:$true] %s549_s1 }
  0xdd   : > { %s4169_s20 = sld [smem:[#allocation41_spill]] }
  0xe3   : > { %s2896_s21 = scalar_lea.hbm %s4169_s20, 16 }
  0xe4   : > { %p2897_p1 = scmp.ne.s32.totalorder %s4169_s20, %s2896_s21  ;;  %p2903_p12 = scmp.lt.u32.totalorder %s2896_s21, %s4169_s20 }
  0xe6   : > { %p2899_p3 = pnand %p2897_p1, %p3402_p8 }
  0xe8   : > { %p2900_p11 = pneg %p2899_p3 }
  0xea   : > { %p2905_p13 = pnand %p2903_p12, %p2900_p11 }
  0xec   : > { %2908 = shalt.err (!%p2905_p13)
}
  0xed   : > { %s2909_s2 = scalar_lea.vmem %s526_s30, 16  ;;  %s2916_s29 = scalar_lea.vmem %s526_s30, 32 }
  0xee   : > { %p2910_p0 = scmp.ne.s32.totalorder %s526_s30, %s2909_s2  ;;  %p2917_p7 = scmp.lt.s32.totalorder %s526_s30, %s526_s30 }
  0xef   : > { %p2918_p9 = scmp.lt.s32.totalorder %s2916_s29, %s2909_s2 }
  0xf0   : > { %p2912_p2 = pnand %p2910_p0, %p3402_p8 }
  0xf1   : > { %p2919_p4 = por %p2918_p9, %p2917_p7 }
  0xf2   : > { %p2913_p5 = pneg %p2912_p2 }
  0xf4   : > { %p2920_p10 = pnand %p2919_p4, %p2913_p5 }
  0xf6   : > { %2923 = shalt.err (!%p2920_p10)
}
  0xf7   : > { %2549 = dma.hbm_to_vmem [thread:$0]  (!%p3386_p6), %s4169_s20, 16, %s526_s30, [#allocation6]  }
  0xf8   : > { %s4170_s26 = sld [smem:[#allocation43_spill]] }
  0xfe   : > { %s2924_s21 = scalar_lea.hbm %s4170_s26, 32 }
  0xff   : > { %p2925_p1 = scmp.ne.s32.totalorder %s4170_s26, %s2924_s21  ;;  %p2931_p12 = scmp.lt.u32.totalorder %s2924_s21, %s4170_s26 }
 0x101   : > { %p2927_p3 = pnand %p2925_p1, %p3402_p8 }
 0x103   : > { %p2928_p11 = pneg %p2927_p3 }
 0x105   : > { %p2933_p13 = pnand %p2931_p12, %p2928_p11 }
 0x107   : > { %2936 = shalt.err (!%p2933_p13)
}
 0x108   : > { %s2937_s2 = scalar_lea.vmem %s550_s1, 32  ;;  %p2945_p7 = scmp.lt.s32.totalorder %s550_s1, %s550_s1 }
 0x109   : > { %p2938_p0 = scmp.ne.s32.totalorder %s550_s1, %s2937_s2  ;;  %p2946_p9 = scmp.lt.s32.totalorder %s2937_s2, %s2937_s2 }
 0x10b   : > { %p2940_p2 = pnand %p2938_p0, %p3402_p8  ;;  %p2947_p4 = por %p2946_p9, %p2945_p7 }
 0x10d   : > { %p2941_p5 = pneg %p2940_p2 }
 0x10f   : > { %p2948_p10 = pnand %p2947_p4, %p2941_p5 }
 0x111   : > { %2951 = shalt.err (!%p2948_p10)
}
 0x112   : > { %2555 = dma.hbm_to_vmem [thread:$0]  (!%p3386_p6), %s4170_s26, 32, %s550_s1, [#allocation9]  }
 0x113   : > { %s3231_s0 = smov [#allocation13]   ;;  %s3232_s17 = smov [#allocation16]  }
 0x114   : > { %s573_s19 = sshll.u32 %s3231_s0, 4  ;;  %s598_s28 = sshll.u32 %s3232_s17, 4  ;;  %s574_s19 = int_to_ptr.vmem [resolvable:$true] %s573_s19  ;;  %s599_s28 = int_to_ptr.vmem [resolvable:$true] %s598_s28 }
 0x115   : > { %s4171_s6 = sld [smem:[#allocation45_spill]] }
 0x11b   : > { %s2952_s25 = scalar_lea.hbm %s4171_s6, 16 }
 0x11c   : > { %p2953_p1 = scmp.ne.s32.totalorder %s4171_s6, %s2952_s25  ;;  %p2959_p12 = scmp.lt.u32.totalorder %s2952_s25, %s4171_s6 }
 0x11e   : > { %p2955_p3 = pnand %p2953_p1, %p3402_p8 }
 0x120   : > { %p2956_p11 = pneg %p2955_p3 }
 0x122   : > { %p2961_p13 = pnand %p2959_p12, %p2956_p11 }
 0x124   : > { %2964 = shalt.err (!%p2961_p13)
}
 0x125   : > { %s2965_s1 = scalar_lea.vmem %s574_s19, 16  ;;  %s2972_s29 = scalar_lea.vmem %s574_s19, 32 }
 0x126   : > { %p2966_p0 = scmp.ne.s32.totalorder %s574_s19, %s2965_s1  ;;  %p2973_p7 = scmp.lt.s32.totalorder %s574_s19, %s574_s19 }
 0x127   : > { %p2974_p9 = scmp.lt.s32.totalorder %s2972_s29, %s2965_s1 }
 0x128   : > { %p2968_p2 = pnand %p2966_p0, %p3402_p8 }
 0x129   : > { %p2975_p4 = por %p2974_p9, %p2973_p7 }
 0x12a   : > { %p2969_p5 = pneg %p2968_p2 }
 0x12c   : > { %p2976_p10 = pnand %p2975_p4, %p2969_p5 }
 0x12e   : > { %2979 = shalt.err (!%p2976_p10)
}
 0x12f   : > { %2561 = dma.hbm_to_vmem [thread:$0]  (!%p3386_p6), %s4171_s6, 16, %s574_s19, [#allocation12]  }
 0x130   : > { %s4172_s9 = sld [smem:[#allocation48_spill]] }
 0x136   : > { %s2980_s25 = scalar_lea.hbm %s4172_s9, 16 }
 0x137   : > { %p2981_p1 = scmp.ne.s32.totalorder %s4172_s9, %s2980_s25  ;;  %p2987_p12 = scmp.lt.u32.totalorder %s2980_s25, %s4172_s9 }
 0x139   : > { %p2983_p3 = pnand %p2981_p1, %p3402_p8 }
 0x13b   : > { %p2984_p11 = pneg %p2983_p3 }
 0x13d   : > { %p2989_p13 = pnand %p2987_p12, %p2984_p11 }
 0x13f   : > { %2992 = shalt.err (!%p2989_p13)
}
 0x140   : > { %s2993_s1 = scalar_lea.vmem %s599_s28, 16  ;;  %s3000_s19 = scalar_lea.vmem %s599_s28, 32 }
 0x141   : > { %p2994_p0 = scmp.ne.s32.totalorder %s599_s28, %s2993_s1  ;;  %p3001_p7 = scmp.lt.s32.totalorder %s599_s28, %s599_s28 }
 0x142   : > { %p3002_p9 = scmp.lt.s32.totalorder %s3000_s19, %s2993_s1 }
 0x143   : > { %p2996_p2 = pnand %p2994_p0, %p3402_p8 }
 0x144   : > { %p3003_p4 = por %p3002_p9, %p3001_p7 }
 0x145   : > { %p2997_p5 = pneg %p2996_p2 }
 0x147   : > { %p3004_p10 = pnand %p3003_p4, %p2997_p5 }
 0x149   : > { %3007 = shalt.err (!%p3004_p10)
}
 0x14a   : > { %2567 = dma.hbm_to_vmem [thread:$0]  (!%p3386_p6), %s4172_s9, 16, %s599_s28, [#allocation15]  }
 0x14b   : > { %s3233_s17 = smov [#allocation19]   ;;  %s3234_s18 = smov [#allocation22]  }
 0x14c   : > { %s623_s21 = sshll.u32 %s3233_s17, 4  ;;  %s647_s25 = sshll.u32 %s3234_s18, 4  ;;  %s624_s21 = int_to_ptr.vmem [resolvable:$true] %s623_s21  ;;  %s648_s25 = int_to_ptr.vmem [resolvable:$true] %s647_s25 }
 0x14d   : > { %s3008_s2 = scalar_lea.hbm %s4106_s12, 16 }
 0x14e   : > { %p3009_p1 = scmp.ne.s32.totalorder %s4106_s12, %s3008_s2  ;;  %p3015_p12 = scmp.lt.u32.totalorder %s3008_s2, %s4106_s12 }
 0x150   : > { %p3011_p3 = pnand %p3009_p1, %p3402_p8 }
 0x152   : > { %p3012_p11 = pneg %p3011_p3 }
 0x154   : > { %p3017_p13 = pnand %p3015_p12, %p3012_p11 }
 0x156   : > { %3020 = shalt.err (!%p3017_p13)
}
 0x157   : > { %s3021_s28 = scalar_lea.vmem %s624_s21, 16  ;;  %s3028_s0 = scalar_lea.vmem %s624_s21, 32 }
 0x158   : > { %p3022_p0 = scmp.ne.s32.totalorder %s624_s21, %s3021_s28  ;;  %p3029_p7 = scmp.lt.s32.totalorder %s624_s21, %s624_s21 }
 0x159   : > { %p3030_p9 = scmp.lt.s32.totalorder %s3028_s0, %s3021_s28 }
 0x15a   : > { %p3024_p2 = pnand %p3022_p0, %p3402_p8 }
 0x15b   : > { %p3031_p4 = por %p3030_p9, %p3029_p7 }
 0x15c   : > { %p3025_p5 = pneg %p3024_p2 }
 0x15e   : > { %p3032_p10 = pnand %p3031_p4, %p3025_p5 }
 0x160   : > { %3035 = shalt.err (!%p3032_p10)
}
 0x161   : > { %2573 = dma.hbm_to_vmem [thread:$0]  (!%p3386_p6), %s4106_s12, 16, %s624_s21, [#allocation18]  }
 0x162   : > { %s3036_s2 = scalar_lea.hbm %s4108_s14, 32 }
 0x163   : > { %p3037_p1 = scmp.ne.s32.totalorder %s4108_s14, %s3036_s2  ;;  %p3043_p12 = scmp.lt.u32.totalorder %s3036_s2, %s4108_s14 }
 0x165   : > { %p3039_p3 = pnand %p3037_p1, %p3402_p8 }
 0x167   : > { %p3040_p11 = pneg %p3039_p3 }
 0x169   : > { %p3045_p13 = pnand %p3043_p12, %p3040_p11 }
 0x16b   : > { %3048 = shalt.err (!%p3045_p13)
}
 0x16c   : > { %s3049_s28 = scalar_lea.vmem %s648_s25, 32  ;;  %p3057_p7 = scmp.lt.s32.totalorder %s648_s25, %s648_s25 }
 0x16d   : > { %p3050_p0 = scmp.ne.s32.totalorder %s648_s25, %s3049_s28  ;;  %p3058_p9 = scmp.lt.s32.totalorder %s3049_s28, %s3049_s28 }
 0x16f   : > { %p3052_p2 = pnand %p3050_p0, %p3402_p8  ;;  %p3059_p4 = por %p3058_p9, %p3057_p7 }
 0x171   : > { %p3053_p5 = pneg %p3052_p2 }
 0x173   : > { %p3060_p10 = pnand %p3059_p4, %p3053_p5 }
 0x175   : > { %3063 = shalt.err (!%p3060_p10)
}
 0x176   : > { %2579 = dma.hbm_to_vmem [thread:$0]  (!%p3386_p6), %s4108_s14, 32, %s648_s25, [#allocation21]  }
 0x177   : > { %s3235_s17 = smov [#allocation25]   ;;  %s3064_s2 = scalar_lea.hbm %s4110_s16, 16 }
 0x178   : > { %s669_s18 = sshll.u32 %s3235_s17, 4  ;;  %p3065_p1 = scmp.ne.s32.totalorder %s4110_s16, %s3064_s2  ;;  %s670_s18 = int_to_ptr.vmem [resolvable:$true] %s669_s18 }
 0x179   : > { %p3071_p12 = scmp.lt.u32.totalorder %s3064_s2, %s4110_s16 }
 0x17a   : > { %p3067_p3 = pnand %p3065_p1, %p3402_p8 }
 0x17c   : > { %p3068_p11 = pneg %p3067_p3 }
 0x17e   : > { %p3073_p13 = pnand %p3071_p12, %p3068_p11 }
 0x180   : > { %3076 = shalt.err (!%p3073_p13)
}
 0x181   : > { %s3077_s25 = scalar_lea.vmem %s670_s18, 16  ;;  %s3084_s28 = scalar_lea.vmem %s670_s18, 32 }
 0x182   : > { %p3078_p0 = scmp.ne.s32.totalorder %s670_s18, %s3077_s25  ;;  %p3085_p7 = scmp.lt.s32.totalorder %s670_s18, %s670_s18 }
 0x183   : > { %p3086_p9 = scmp.lt.s32.totalorder %s3084_s28, %s3077_s25 }
 0x184   : > { %p3080_p2 = pnand %p3078_p0, %p3402_p8 }
 0x185   : > { %p3087_p4 = por %p3086_p9, %p3085_p7 }
 0x186   : > { %p3081_p5 = pneg %p3080_p2 }
 0x188   : > { %p3088_p10 = pnand %p3087_p4, %p3081_p5 }
 0x18a   : > { %3091 = shalt.err (!%p3088_p10)
}
 0x18b   : > { %s4173_s27 = sld [smem:[#allocation36_spill]]  ;;  %s4174_s17 = sld [smem:[#allocation37_spill]] }
 0x18c   : > { %2585 = dma.hbm_to_vmem [thread:$0]  (!%p3386_p6), %s4110_s16, 16, %s670_s18, [#allocation24]  }
 0x18d   : > { %s2020_s3 = sadd.s32 4294967294, %s3216_s24   ;;  %s3677_s4 = sadd.s32 1, %s3216_s24  }
 0x18e   : > { %s47_s11 = ssub.s32 %s3216_s24, %s3677_s4  ;;  %s50_s2 = sadd.s32 1, %s3212_s23 }
 0x18f   : > { %p48_p8 = scmp.eq.s32.totalorder %s47_s11, 0  ;;  %p57_p1 = scmp.ne.s32.totalorder %s3212_s23, %s3208_s22 }
 0x190   : > { %p58_p3 = scmp.eq.s32.totalorder %s3216_s24, 0  ;;  %p492_p2 = scmp.eq.s32.totalorder %s2020_s3, 1 }
 0x191   : > { %p63_p11 = scmp.ne.s32.totalorder %s3208_s22, %s4173_s27  ;;  %p4176_p13 = scmp.eq.s32.totalorder %s4174_s17, 0 }
 0x192   : > { %s3688_s30 = scalar_select %p48_p8, %s3212_s23, %s50_s2  }
 0x193   : > { %p3690_p12 = por %p58_p3, %p57_p1  ;;  %p3696_p6 = por %p4176_p13, %p63_p11 }
 0x194   : > { %p486_p0 = scmp.eq.s32.totalorder %s4174_s17, 1  ;;  %p2608_p5 = scmp.lt.s32.totalorder %s3216_s24, 2 }
 0x195   : > { %s689_s19 = sand.u32 1, %s3212_s23   ;;  %p3707_p9 = por %p492_p2, %p63_p11 }
 0x196   : > { %p3703_p7 = por %p486_p0, %p57_p1  ;;  %s2037_s28 = sshll.u32 %s689_s19, 3 }
 0x197   : > { %s4179_s25 = scalar_select %p3707_p9, 1, 0 }
 0x198   : > { %s4178_s29 = scalar_select %p3703_p7, 1, 0 }
 0x199   : > { %s2038_s21 = sshll.u32 %s3216_s24, 7  ;;  %s4180_s11 = sld [smem:[#allocation39_spill]] }
 0x19a   : > { %s693_s17 = scalar_lea.vmem [#allocation2], %s2037_s28  ;;  %p3721_p4 = pnand %p2608_p5, %p3690_p12 }
 0x19b   : > { %s700_s3 = sshll.u32 %s693_s17, 4  ;;  %s690_s6 = scalar_lea.sflag [#allocation3], %s689_s19  ;;  %s3717_s3 = int_to_ptr.vmem [resolvable:$true] %s700_s3 }
 0x19c   : > { %p3094_p8 = pneg %p3721_p4 }
 0x19f   : > { %s3715_s2 = scalar_lea.hbm %s4180_s11, %s2038_s21  ;;  %s3097_s0 = scalar_lea.hbm %s4180_s11, 256 }
 0x1a0   : > { %s3092_s7 = scalar_lea.hbm %s3715_s2, 128  ;;  %p3098_p11 = scmp.lt.u32.totalorder %s3715_s2, %s4180_s11 }
 0x1a1   : > { %p3093_p10 = scmp.ne.s32.totalorder %s3715_s2, %s3092_s7  ;;  %p3099_p12 = scmp.lt.u32.totalorder %s3097_s0, %s3092_s7 }
 0x1a2   : > { %p3101_p0 = scmp.lt.u32.totalorder %s3092_s7, %s3715_s2 }
 0x1a3   : > { %p3095_p1 = pnand %p3094_p8, %p3093_p10  ;;  %p3100_p13 = por %p3099_p12, %p3098_p11 }
 0x1a5   : > { %p3096_p3 = pneg %p3095_p1  ;;  %p3102_p2 = por %p3101_p0, %p3100_p13 }
 0x1a7   : > { %p3103_p5 = pnand %p3102_p2, %p3096_p3 }
 0x1a9   : > { %3106 = shalt.err (!%p3103_p5)
}
 0x1aa   : > { %s3107_s19 = scalar_lea.vmem %s3717_s3, 128  ;;  %s3236_s17 = smov [#allocation2]  }
 0x1ab   : > { %p3108_p10 = scmp.ne.s32.totalorder %s3717_s3, %s3107_s19  ;;  %s3112_s28 = sshll.u32 %s3236_s17, 4  ;;  %s3113_s28 = int_to_ptr.vmem [resolvable:$false] %s3112_s28 }
 0x1ac   : > { %s3114_s21 = scalar_lea.vmem %s3113_s28, 256  ;;  %p3115_p7 = scmp.lt.s32.totalorder %s3717_s3, %s3113_s28 }
 0x1ad   : > { %p3110_p1 = pnand %p3108_p10, %p3094_p8  ;;  %p3116_p11 = scmp.lt.s32.totalorder %s3114_s21, %s3107_s19 }
 0x1af   : > { %p3111_p9 = pneg %p3110_p1  ;;  %p3117_p12 = por %p3116_p11, %p3115_p7 }
 0x1b1   : > { %p3118_p13 = pnand %p3117_p12, %p3111_p9 }
 0x1b3   : > { %3121 = shalt.err (!%p3118_p13)
}
 0x1b4   : > { %2589 = dma.hbm_to_vmem [thread:$0]  (!%p3721_p4), %s3715_s2, 128, %s3717_s3, %s690_s6  }
 0x1b5   : > { %s4182_s7 = sld [smem:[#allocation38_spill]] }
 0x1bb   : > { %p4183_p3 = scmp.ne.s32.totalorder %s4182_s7, 0 }
 0x1bc   : > { %s3753_s0 = sand.u32 (!%p4183_p3), 1, %s3208_s22  }
 0x1bd   : > { %709 = sbr.rel (%p4183_p3) target bundleno = 2363 (0x93b), region = 100  ;;  %s4137_s1 = sshll.u32 (!%p4183_p3), %s3753_s0, 3 }
 0x1be   : > { %s712_s27 = scalar_lea.sflag (!%p4183_p3), [#allocation3], %s3753_s0  ;;  %s3759_s19 = scalar_lea.vmem (!%p4183_p3), [#allocation2], %s4137_s1 }
 0x1c4   : > { %3167 = dma.done.wait (%p3696_p6), %s712_s27, 128  }
 0x1c5   : > { %3169 = vsyncadd (%p3696_p6), %s712_s27, 4294967168  ;;  %s4184_s5 = sld [smem:[#allocation37_spill]] }
 0x1cb   : > { %p4185_p7 = scmp.eq.s32.totalorder %s4184_s5, 0 }
 0x1cd   : > { %3171 = dma.done.wait (%p4185_p7), [#allocation6], 400   ;;  %p4186_p9 = pmov %p4185_p7 }
 0x1ce   : > { %p4187_p4 = pmov %p4185_p7 }
 0x1cf   : > { %3173 = vsyncadd (%p4186_p9), [#allocation6], 4294966896 }
 0x1d0   : > { %3175 = dma.done.wait (%p4187_p4), [#allocation9], 544   ;;  %p4188_p8 = pmov %p4187_p4 }
 0x1d1   : > { %p4189_p0 = pmov %p4187_p4 }
 0x1d2   : > { %3177 = vsyncadd (%p4188_p8), [#allocation9], 4294966752 }
 0x1d3   : > { %3179 = dma.done.wait (%p4189_p0), [#allocation12], 528   ;;  %p4190_p2 = pmov %p4189_p0 }
 0x1d4   : > { %p4191_p6 = pmov %p4189_p0 }
 0x1d5   : > { %3181 = vsyncadd (%p4190_p2), [#allocation12], 4294966768 }
 0x1d6   : > { %3183 = dma.done.wait (%p4191_p6), [#allocation15], 32   ;;  %p4192_p5 = pmov %p4189_p0 }
 0x1d7   : > { %p4193_p10 = pmov %p4189_p0 }
 0x1d8   : > { %3185 = vsyncadd (%p4192_p5), [#allocation15], 4294967264 }
 0x1d9   : > { %3187 = dma.done.wait (%p4193_p10), [#allocation18], 32   ;;  %p4194_p1 = pmov %p4189_p0 }
 0x1da   : > { %p4195_p11 = pmov %p4189_p0 }
 0x1db   : > { %3189 = vsyncadd (%p4194_p1), [#allocation18], 4294967264 }
 0x1dc   : > { %3191 = dma.done.wait (%p4195_p11), [#allocation21], 4128   ;;  %p4196_p12 = pmov %p4189_p0 }
 0x1dd   : > { %p4197_p13 = pmov %p4189_p0 }
 0x1de   : > { %3193 = vsyncadd (%p4196_p12), [#allocation21], 4294963168 }
 0x1df   : > { %3195 = dma.done.wait (%p4197_p13), [#allocation24], 32   ;;  %p4198_p3 = pmov %p4189_p0 }
 0x1e0   : > { %v3237_v0 = vmov 0.0|0.0   ;;  %vm3238_vm0 = vmmov 0   ;;  %v3239_v1 = vmov 0.0   ;;  %v829_v2 = vld [vmem:[#allocation5] sm:$0xff]  ;;  %v830_v3 = vld [vmem:[#allocation5 + $0x8] sm:$0xff]  ;;  %v916_v6 = vld [vmem:[#allocation8 + $0x18] sm:$0xff]  ;;  %v919_v24 = vlaneseq }
 0x1e1   : > { %3197 = vsyncadd (%p4198_p3), [#allocation24], 4294967264  ;;  %2336 = vmatprep.subr.bf16.mxu1 %v3237_v0  ;;  %2166 = vmatprep.mubr.msk.f32.mxu1 %vm3238_vm0, %v3239_v1  ;;  %v2337_v4 = vpack.c.bf16 %v830_v3, %v829_v2  ;;  %v914_v5 = vld [vmem:[#allocation8 + $0x8] sm:$0xff]  ;;  %v913_v7 = vld [vmem:[#allocation8] sm:$0xff]  ;;  %vm839_vm1 = vcmask 195584   ;;  %vm929_vm2 = vcmask 130048  }
 0x1e2   : > { %2349 = vmatprep.subr.bf16.mxu0 %v3237_v0  ;;  %2212 = vmatprep.mubr.msk.f32.mxu0 %vm3238_vm0, %v3239_v1  ;;  %v915_v8 = vld [vmem:[#allocation8 + $0x10] sm:$0xff]  ;;  %v2339_v10 = vpack.c.bf16 %v916_v6, %v914_v5  ;;  %v1013_v13 = vld [vmem:[#allocation11] sm:$0xff]  ;;  %v1016_v17 = vld [vmem:[#allocation11 + $0x18] sm:$0xff]  ;;  %s4199_s2 = sld [smem:[#allocation50_spill]]  ;;  %v3826_v28 = vshrl.u32 %v919_v24, 7  ;;  %s4200_s27 = sld [smem:[#allocation46_spill]] }
 0x1e3   : > { %2338 = vmatpush3.bf16.msra.mxu1 %v2337_v4  ;;  %v831_v9 = vld [vmem:[#allocation5 + $0x10] sm:$0xff]  ;;  %v2341_v12 = vpack.c.bf16 %v915_v8, %v913_v7  ;;  %v1014_v14 = vld [vmem:[#allocation11 + $0x8] sm:$0xff]  ;;  %v917_v31 = vld [vmem:[#allocation10] sm:$0x3]  ;;  %vm1024_vm3 = vcmask 261120   ;;  %s3240_s21 = smov 124  }
 0x1e4   : > { %2164 = vmatprep.subr.mxu1 %v3239_v1  ;;  %v828_v11 = vld [vmem:[%s3759_s19] sm:$0xff]  ;;  %v2344_v16 = vpack.c.bf16 %v1014_v14, %v1013_v13  ;;  %v925_v30 = vsub.s32 1, %v3826_v28  ;;  %v921_v48 = vsub.s32 0, %v3826_v28  ;;  %v1286_v13 = vld [vmem:[#allocation20] sm:$0xff]  ;;  %s4201_s19 = sld [smem:[#allocation51_spill]]  ;;  %s3241_s7 = smov 96  }
 0x1e5   : > { %v1015_v15 = vld [vmem:[#allocation11 + $0x10] sm:$0xff]  ;;  %v2056_v49 = vld [vmem:[#allocation7] ss:$0 sm:$0xff]  ;;  %vm1413_vm6 = vcmask 31744   ;;  %s4202_s1 = sld [smem:[#allocation52_spill]]  ;;  %vm1636_vm7 = vcmask 1043456  }
 0x1e6   : > { %v2347_v18 = vpack.c.bf16 %v1016_v17, %v1015_v15  ;;  %v926_v34 = vrot.slane %v917_v31, %v925_v30  ;;  %v922_v53 = vrot.slane %v917_v31, %v921_v48  ;;  %v1288_v14 = vld [vmem:[#allocation20 + $0x10] sm:$0xff]  ;;  %v1293_v17 = vld [vmem:[#allocation20 + $0x38] sm:$0xff]  ;;  %s4203_s28 = sld [smem:[#allocation53_spill]]  ;;  %s3242_s3 = smov 32   ;;  %vm1801_vm8 = vcmask 293888  }
 0x1e7   : > { %2165 = vmatpush3.msra.mxu1 %v831_v9  ;;  %v2061_v15 = vld [vmem:[#allocation13] ss:$0 sm:$0xff]  ;;  %s4204_s9 = sshll.u32 %s3753_s0, 3  ;;  %p4207_p9 = scmp.ne.s32.totalorder %s4178_s29, 0 }
 0x1e8   : > { %2167 = vmatmul.mubr.msk.f32.vlgmr.msra.gmra.mrb[0].mxu1 %vm839_vm1, %v828_v11  ;;  %2340 = vmatprep.subr.bf16.mxu1 %v2339_v10  ;;  %v1098_v19 = vld [vmem:[%s4199_s2] sm:$0xff]  ;;  %v1099_v20 = vld [vmem:[%s4199_s2 + $0x8] sm:$0xff]  ;;  %v1100_v22 = vld [vmem:[%s4199_s2 + $0x10] sm:$0xff] }
 0x1e9   : > { %2342 = vmatpush1.bf16.msra.mxu1 %v2341_v12  ;;  %996 = vmatprep.mubr.f32.mxu1 %v3239_v1  ;;  %v2350_v21 = vpack.c.bf16 %v1099_v20, %v1098_v19  ;;  %v1101_v23 = vld [vmem:[%s4199_s2 + $0x18] sm:$0xff]  ;;  %v1102_v26 = vld [vmem:[%s4199_s2 + $0x20] sm:$0xff]  ;;  %v1103_v27 = vld [vmem:[%s4199_s2 + $0x28] sm:$0xff]  ;;  %v2381_v19 = vpack.c.bf16 %v1288_v14, %v1286_v13 }
 0x1ea   : > { %2343 = vmatprep.subr.bf16.mxu1 %v3237_v0  ;;  %v2353_v25 = vpack.c.bf16 %v1101_v23, %v1100_v22  ;;  %v2356_v29 = vpack.c.bf16 %v1103_v27, %v1102_v26  ;;  %v1104_v32 = vld [vmem:[%s4199_s2 + $0x30] sm:$0xff]  ;;  %v1105_v33 = vld [vmem:[%s4199_s2 + $0x38] sm:$0xff]  ;;  %v1106_v36 = vld [vmem:[%s4199_s2 + $0x40] sm:$0xff] }
 0x1eb   : > { %2351 = vmatpush3.bf16.msra.mxu0 %v2350_v21  ;;  %v2359_v35 = vpack.c.bf16 %v1105_v33, %v1104_v32  ;;  %v1107_v37 = vld [vmem:[%s4199_s2 + $0x48] sm:$0xff]  ;;  %v1108_v39 = vld [vmem:[%s4199_s2 + $0x50] sm:$0xff]  ;;  %v1109_v40 = vld [vmem:[%s4199_s2 + $0x58] sm:$0xff] }
 0x1ec   : > { %2058 = vmatmul.mubr.msk.f32.vlgmr.msra.gmra.mrb[2].mxu1 %vm929_vm2, %v828_v11  ;;  %2352 = vmatprep.subr.bf16.mxu0 %v3237_v0  ;;  %v2362_v38 = vpack.c.bf16 %v1107_v37, %v1106_v36  ;;  %v2365_v41 = vpack.c.bf16 %v1109_v40, %v1108_v39  ;;  %v1110_v42 = vld [vmem:[%s4199_s2 + $0x60] sm:$0xff]  ;;  %v1111_v43 = vld [vmem:[%s4199_s2 + $0x68] sm:$0xff]  ;;  %v1112_v45 = vld [vmem:[%s4199_s2 + $0x70] sm:$0xff] }
 0x1ed   : > { %2177 = vmatprep.mubr.msk.f32.mxu1 %vm3238_vm0, %v3239_v1  ;;  %2345 = vmatpush3.bf16.msra.mxu1 %v2344_v16  ;;  %v2368_v44 = vpack.c.bf16 %v1111_v43, %v1110_v42  ;;  %v1113_v46 = vld [vmem:[%s4199_s2 + $0x78] sm:$0xff]  ;;  %v1191_v60 = vld [vmem:[%s4200_s27] sm:$0xff]  ;;  %v1192_v61 = vld [vmem:[%s4200_s27 + $0x8] sm:$0xff]  ;;  %s2073_s2 = sshll.u32 %s4184_s5, 7  ;;  %s1804_s5 = scalar_lea.sflag [#allocation4], %s3753_s0 }
 0x1ee   : > { %2346 = vmatprep.subr.bf16.mxu1 %v3237_v0  ;;  %v2371_v47 = vpack.c.bf16 %v1113_v46, %v1112_v45  ;;  %v2374_v2 = vpack.c.bf16 %v1192_v61, %v1191_v60  ;;  %v1193_v3 = vld [vmem:[%s4200_s27 + $0x10] sm:$0xff]  ;;  %v1194_v4 = vld [vmem:[%s4200_s27 + $0x18] sm:$0xff]  ;;  %v1292_v24 = vld [vmem:[#allocation20 + $0x30] sm:$0xff] }
 0x1ef   : > { %2354 = vmatpush3.bf16.msra.mxu0 %v2353_v25  ;;  %v2377_v8 = vpack.c.bf16 %v1194_v4, %v1193_v3  ;;  %v1287_v10 = vld [vmem:[#allocation20 + $0x8] sm:$0xff]  ;;  %v1289_v11 = vld [vmem:[#allocation20 + $0x18] sm:$0xff]  ;;  %v1290_v23 = vld [vmem:[#allocation20 + $0x20] sm:$0xff] }
 0x1f0   : > { %2355 = vmatprep.subr.bf16.mxu0 %v3237_v0  ;;  %v2379_v12 = vpack.c.bf16 %v1289_v11, %v1287_v10  ;;  %v1291_v16 = vld [vmem:[#allocation20 + $0x28] sm:$0xff]  ;;  %v1297_v26 = vld [vmem:[#allocation20 + $0x58] sm:$0xff]  ;;  %v2385_v27 = vpack.c.bf16 %v1292_v24, %v1290_v23  ;;  %v1294_v32 = vld [vmem:[#allocation20 + $0x40] sm:$0xff] }
 0x1f1   : > { %2348 = vmatpush3.bf16.msra.mxu1 %v2347_v18  ;;  %v2383_v22 = vpack.c.bf16 %v1293_v17, %v1291_v16  ;;  %v1295_v25 = vld [vmem:[#allocation20 + $0x48] sm:$0xff]  ;;  %v1296_v33 = vld [vmem:[#allocation20 + $0x50] sm:$0xff]  ;;  %v1301_v36 = vld [vmem:[#allocation20 + $0x78] sm:$0xff] }
 0x1f2   : > { %2373 = vmatprep.subr.bf16.mxu1 %v3237_v0  ;;  %v2387_v31 = vpack.c.bf16 %v1297_v26, %v1295_v25  ;;  %v2389_v37 = vpack.c.bf16 %v1296_v33, %v1294_v32  ;;  %v1298_v39 = vld [vmem:[#allocation20 + $0x60] sm:$0xff]  ;;  %v1300_v40 = vld [vmem:[#allocation20 + $0x70] sm:$0xff]  ;;  %v1305_v42 = vld [vmem:[#allocation20 + $0x98] sm:$0xff] }
 0x1f3   : > { %2357 = vmatpush3.bf16.msra.mxu0 %v2356_v29  ;;  %v2393_v43 = vpack.c.bf16 %v1300_v40, %v1298_v39  ;;  %v1302_v45 = vld [vmem:[#allocation20 + $0x80] sm:$0xff]  ;;  %v1304_v46 = vld [vmem:[#allocation20 + $0x90] sm:$0xff] }
 0x1f4   : > { %2358 = vmatprep.subr.bf16.mxu0 %v3237_v0  ;;  %v1310_v60 = vld [vmem:[#allocation20 + $0xc0] sm:$0xff]  ;;  %v1312_v61 = vld [vmem:[#allocation20 + $0xd0] sm:$0xff] }
 0x1f5   : > { %v1314_v4 = vld [vmem:[#allocation20 + $0xe0] sm:$0xff]  ;;  %v1457_v10 = vld [vmem:[%s4201_s19 + $0x8] sm:$0xff] }
 0x1f6   : > { %v1459_v13 = vld [vmem:[%s4201_s19 + $0x18] sm:$0xff]  ;;  %v1461_v16 = vld [vmem:[%s4201_s19 + $0x28] sm:$0xff]  ;;  %v1466_v24 = vld [vmem:[%s4201_s19 + $0x50] sm:$0xff] }
 0x1f7   : > { %2360 = vmatpush3.bf16.msra.mxu0 %v2359_v35  ;;  %v1299_v35 = vld [vmem:[#allocation20 + $0x68] sm:$0xff]  ;;  %v1470_v32 = vld [vmem:[%s4201_s19 + $0x70] sm:$0xff] }
 0x1f8   : > { %2361 = vmatprep.subr.bf16.mxu0 %v3237_v0  ;;  %v1467_v25 = vld [vmem:[%s4201_s19 + $0x58] sm:$0xff] }
 0x1f9   : > { %v2427_v26 = vpack.c.bf16 %v1467_v25, %v1466_v24  ;;  %v1471_v33 = vld [vmem:[%s4201_s19 + $0x78] sm:$0xff]  ;;  %v1632_v24 = vld [vmem:[%s4202_s1] sm:$0xf]  ;;  %s4205_s1 = sld [smem:[#allocation54_spill]] }
 0x1fb   : > { %2363 = vmatpush3.bf16.msra.mxu0 %v2362_v38  ;;  %v2391_v38 = vpack.c.bf16 %v1301_v36, %v1299_v35  ;;  %v2064_v35 = vld [vmem:[#allocation14] ss:$0 sm:$0xff] }
 0x1fc   : > { %2364 = vmatprep.subr.bf16.mxu0 %v3237_v0 }
 0x1ff   : > { %2366 = vmatpush3.bf16.msra.mxu0 %v2365_v41  ;;  %v1303_v41 = vld [vmem:[#allocation20 + $0x88] sm:$0xff]  ;;  %s4049_s17 = scalar_lea.hbm %s4205_s1, %s2073_s2 }
 0x200   : > { %2367 = vmatprep.subr.bf16.mxu0 %v3237_v0 }
 0x203   : > { %2369 = vmatpush3.bf16.msra.mxu0 %v2368_v44  ;;  %v2395_v44 = vpack.c.bf16 %v1305_v42, %v1303_v41 }
 0x204   : > { %2370 = vmatprep.subr.bf16.mxu0 %v3237_v0 }
 0x207   : > { %2372 = vmatpush3.bf16.msra.mxu0 %v2371_v47  ;;  %v1307_v47 = vld [vmem:[#allocation20 + $0xa8] sm:$0xff] }
 0x208   : > { %2411 = vmatprep.subr.bf16.mxu0 %v3237_v0 }
 0x2bb   : > { %v909_v50 = vpop.f32.mrb[0].mxu1 }
 0x2bc   : > { %v3869_v51 = vadd.f32 %v2056_v49, %v909_v50  ;;  %v2168_v52 = vpop.f32.mrb[1].mxu1  ;;  %v1309_v49 = vld [vmem:[#allocation20 + $0xb8] sm:$0xff]  ;;  %v2397_v50 = vpack.c.bf16 %v1304_v46, %v1302_v45 }
 0x2bd   : > { %v2399_v52 = vpack.c.bf16 %v1309_v49, %v1307_v47 }
 0x2be   : > { %v1004_v54 = vmul.f32 1.442695, %v3869_v51  ;;  %vm1003_vm4 = vcmp.gt.f32.partialorder %v3869_v51, 0.0 }
 0x2bf   : > { %v998_v55 = vpop.f32.mrb[2].mxu1 }
 0x2c0   : > { %2680 = vpow2.f32 %v1004_v54  ;;  %v999_v56 = vadd.f32 %v998_v55, %v922_v53  ;;  %v1000_v57 = vpop.f32.mrb[3].mxu1  ;;  %v1306_v53 = vld [vmem:[#allocation20 + $0xa0] sm:$0xff]  ;;  %v1308_v54 = vld [vmem:[#allocation20 + $0xb0] sm:$0xff]  ;;  %v1311_v55 = vld [vmem:[#allocation20 + $0xc8] sm:$0xff] }
 0x2c1   : > { %v3874_v58 = vadd.f32 %v1000_v57, %v926_v34  ;;  %v2401_v57 = vpack.c.bf16 %v1308_v54, %v1306_v53 }
 0x2c2   : > { %v1009_v59 = vmul.f32 1.442695, %v999_v56  ;;  %vm1008_vm5 = vcmp.gt.f32.partialorder %v999_v56, 0.0 }
 0x2c4   : > { %2682 = vpow2.f32 %v1009_v59 }
 0x2ca   : > { %v2681_v62 = vpop.eup %2680 }
 0x2cb   : > { %v2059_v63 = vadd.f32 -1.0, %v2681_v62  ;;  %v1315_v62 = vld [vmem:[#allocation20 + $0xe8] sm:$0xff] }
 0x2cd   : > { %v1007_v5 = vsel %vm1003_vm4, %v3869_v51, %v2059_v63  ;;  %v1317_v63 = vld [vmem:[#allocation20 + $0xf8] sm:$0xff] }
 0x2ce   : > { %v2683_v6 = vpop.eup %2682  ;;  %2178 = vmatmul.mubr.msk.f32.vlgmr.msra.gmra.mrb[4].mxu1 %vm1024_vm3, %v1007_v5  ;;  %v2407_v3 = vpack.c.bf16 %v1317_v63, %v1315_v62  ;;  %v1316_v5 = vld [vmem:[#allocation20 + $0xf0] sm:$0xff] }
 0x2cf   : > { %v2060_v7 = vadd.f32 -1.0, %v2683_v6  ;;  %2375 = vmatpush3.bf16.msra.mxu1 %v2374_v2  ;;  %2223 = vmatprep.mubr.msk.f32.mxu1 %vm3238_vm0, %v3239_v1  ;;  %v2405_v2 = vpack.c.bf16 %v1312_v61, %v1310_v60  ;;  %v2063_v6 = vld [vmem:[#allocation19] ss:$0 sm:$0xff] }
 0x2d0   : > { %2376 = vmatprep.subr.bf16.mxu1 %v3237_v0 }
 0x2d1   : > { %v1012_v9 = vsel %vm1008_vm5, %v999_v56, %v2060_v7  ;;  %v1313_v56 = vld [vmem:[#allocation20 + $0xd8] sm:$0xff]  ;;  %v2409_v7 = vpack.c.bf16 %v1316_v5, %v1314_v4 }
 0x2d2   : > { %2213 = vmatmul.mubr.f32.vlgmr.msra.gmra.mrb[0].mxu0 %v1012_v9  ;;  %v2403_v59 = vpack.c.bf16 %v1313_v56, %v1311_v55  ;;  %v1456_v9 = vld [vmem:[%s4201_s19] sm:$0xff] }
 0x2d3   : > { %2378 = vmatpush3.bf16.msra.mxu1 %v2377_v8  ;;  %2258 = vmatprep.mubr.msk.f32.mxu0 %vm3238_vm0, %v3239_v1  ;;  %v2412_v11 = vpack.c.bf16 %v1457_v10, %v1456_v9 }
 0x2d4   : > { %2380 = vmatprep.subr.bf16.mxu1 %v2379_v12  ;;  %v1458_v12 = vld [vmem:[%s4201_s19 + $0x10] sm:$0xff] }
 0x2d5   : > { %2413 = vmatpush3.bf16.msra.mxu0 %v2412_v11  ;;  %v2415_v14 = vpack.c.bf16 %v1459_v13, %v1458_v12  ;;  %v2066_v12 = vld [vmem:[#allocation16] ss:$0 sm:$0xff] }
 0x2d6   : > { %2414 = vmatprep.subr.bf16.mxu0 %v3237_v0 }
 0x2d9   : > { %2416 = vmatpush3.bf16.msra.mxu0 %v2415_v14 }
 0x2da   : > { %2417 = vmatprep.subr.bf16.mxu0 %v3237_v0 }
 0x3a1   : > { %v1094_v18 = vpop.f32.mrb[4].mxu1 }
 0x3a2   : > { %v1095_v20 = vadd.f32 %v2061_v15, %v1094_v18  ;;  %v2179_v21 = vpop.f32.mrb[5].mxu1  ;;  %v1460_v15 = vld [vmem:[%s4201_s19 + $0x20] sm:$0xff]  ;;  %v1462_v18 = vld [vmem:[%s4201_s19 + $0x30] sm:$0xff] }
 0x3a3   : > { %v2418_v17 = vpack.c.bf16 %v1461_v16, %v1460_v15  ;;  %v1464_v21 = vld [vmem:[%s4201_s19 + $0x40] sm:$0xff] }
 0x3a4   : > { %2224 = vmatmul.mubr.msk.f32.vlgmr.msra.gmra.mrb[6].mxu1 %vm1024_vm3, %v1095_v20 }
 0x3a5   : > { %2382 = vmatpush1.bf16.msra.mxu1 %v2381_v19  ;;  %v1187_v29 = vpop.f32.mrb[0].mxu0  ;;  %1394 = vmatprep.mubr.f32.mxu1 %v3239_v1  ;;  %v1463_v19 = vld [vmem:[%s4201_s19 + $0x38] sm:$0xff] }
 0x3a6   : > { %2384 = vmatprep.subr.bf16.mxu1 %v2383_v22  ;;  %v2214_v34 = vpop.f32.mrb[1].mxu0  ;;  %v1188_v8 = vadd.f32 %v2063_v6, %v1187_v29  ;;  %2419 = vmatpush3.bf16.msra.mxu0 %v2418_v17  ;;  %v2421_v20 = vpack.c.bf16 %v1463_v19, %v1462_v18  ;;  %v1465_v22 = vld [vmem:[%s4201_s19 + $0x48] sm:$0xff] }
 0x3a7   : > { %2420 = vmatprep.subr.bf16.mxu0 %v3237_v0  ;;  %v2424_v23 = vpack.c.bf16 %v1465_v22, %v1464_v21  ;;  %v1469_v29 = vld [vmem:[%s4201_s19 + $0x68] sm:$0xff]  ;;  %v2433_v34 = vpack.c.bf16 %v1471_v33, %v1470_v32  ;;  %v1714_v32 = vld [vmem:[%s4203_s28 + $0x18] sm:$0xff] }
 0x3a9   : > { %2386 = vmatpush1.bf16.msra.mxu1 %v2385_v27  ;;  %v1468_v27 = vld [vmem:[%s4201_s19 + $0x60] sm:$0xff] }
 0x3aa   : > { %2388 = vmatprep.subr.bf16.mxu1 %v2387_v31  ;;  %2422 = vmatpush3.bf16.msra.mxu0 %v2421_v20  ;;  %v2430_v31 = vpack.c.bf16 %v1469_v29, %v1468_v27  ;;  %v1712_v27 = vld [vmem:[%s4203_s28 + $0x8] sm:$0xff]  ;;  %v1713_v29 = vld [vmem:[%s4203_s28 + $0x10] sm:$0xff] }
 0x3ab   : > { %2423 = vmatprep.subr.bf16.mxu0 %v3237_v0  ;;  %v2463_v33 = vpack.c.bf16 %v1714_v32, %v1713_v29 }
 0x3ad   : > { %2390 = vmatpush1.bf16.msra.mxu1 %v2389_v37 }
 0x3ae   : > { %2392 = vmatprep.subr.bf16.mxu1 %v2391_v38  ;;  %2425 = vmatpush3.bf16.msra.mxu0 %v2424_v23 }
 0x3af   : > { %2426 = vmatprep.subr.bf16.mxu0 %v3237_v0 }
 0x3b1   : > { %2394 = vmatpush1.bf16.msra.mxu1 %v2393_v43  ;;  %v1318_v43 = vld [vmem:[#allocation22] sm:$0x3] }
 0x3b2   : > { %2396 = vmatprep.subr.bf16.mxu1 %v2395_v44  ;;  %2428 = vmatpush3.bf16.msra.mxu0 %v2427_v26  ;;  %v1327_v45 = vrot.slane %v1318_v43, %v925_v30  ;;  %v1323_v55 = vrot.slane %v1318_v43, %v921_v48  ;;  %v1720_v43 = vld [vmem:[%s4203_s28 + $0x48] sm:$0xff] }
 0x3b3   : > { %2429 = vmatprep.subr.bf16.mxu0 %v3237_v0 }
 0x3b5   : > { %2398 = vmatpush1.bf16.msra.mxu1 %v2397_v50 }
 0x3b6   : > { %2400 = vmatprep.subr.bf16.mxu1 %v2399_v52  ;;  %2431 = vmatpush3.bf16.msra.mxu0 %v2430_v31 }
 0x3b7   : > { %2432 = vmatprep.subr.bf16.mxu0 %v3237_v0 }
 0x3b9   : > { %2402 = vmatpush1.bf16.msra.mxu1 %v2401_v57 }
 0x3ba   : > { %2404 = vmatprep.subr.bf16.mxu1 %v2403_v59  ;;  %2434 = vmatpush3.bf16.msra.mxu0 %v2433_v34 }
 0x3bb   : > { %2459 = vmatprep.subr.bf16.mxu0 %v3237_v0 }
 0x3bd   : > { %2406 = vmatpush1.bf16.msra.mxu1 %v2405_v2 }
 0x3be   : > { %2408 = vmatprep.subr.bf16.mxu1 %v2407_v3 }
 0x3c1   : > { %2410 = vmatpush1.bf16.msra.mxu1 %v2409_v7 }
 0x3c2   : > { %2435 = vmatprep.subr.bf16.mxu1 %v3237_v0 }
 0x3c4   : > { %1395 = vmatmul.mubr.f32.vlgmr.msra.gmra.mrb[8].mxu1 %v1188_v8 }
 0x3c5   : > { %2293 = vmatprep.mubr.msk.f32.mxu1 %vm3238_vm0, %v3239_v1  ;;  %2437 = vmatpush3.bf16.msra.mxu1 %v2412_v11 }
 0x3c6   : > { %2438 = vmatprep.subr.bf16.mxu1 %v3237_v0 }
 0x3c9   : > { %2440 = vmatpush3.bf16.msra.mxu1 %v2415_v14  ;;  %v2067_v14 = vld [vmem:[#allocation17] ss:$0 sm:$0xff] }
 0x3ca   : > { %2441 = vmatprep.subr.bf16.mxu1 %v3237_v0 }
 0x3cd   : > { %2443 = vmatpush3.bf16.msra.mxu1 %v2418_v17 }
 0x3ce   : > { %2444 = vmatprep.subr.bf16.mxu1 %v3237_v0 }
 0x3d1   : > { %2446 = vmatpush3.bf16.msra.mxu1 %v2421_v20 }
 0x3d2   : > { %2447 = vmatprep.subr.bf16.mxu1 %v3237_v0 }
 0x3d5   : > { %2449 = vmatpush3.bf16.msra.mxu1 %v2424_v23 }
 0x3d6   : > { %2450 = vmatprep.subr.bf16.mxu1 %v3237_v0 }
 0x3d9   : > { %2452 = vmatpush3.bf16.msra.mxu1 %v2427_v26  ;;  %v1711_v26 = vld [vmem:[%s4203_s28] sm:$0xff] }
 0x3da   : > { %2453 = vmatprep.subr.bf16.mxu1 %v3237_v0 }
 0x3dd   : > { %2455 = vmatpush3.bf16.msra.mxu1 %v2430_v31  ;;  %v2460_v31 = vpack.c.bf16 %v1712_v27, %v1711_v26 }
 0x3de   : > { %2456 = vmatprep.subr.bf16.mxu1 %v3237_v0 }
 0x3e1   : > { %2458 = vmatpush3.bf16.msra.mxu1 %v2433_v34  ;;  %v1715_v34 = vld [vmem:[%s4203_s28 + $0x20] sm:$0xff] }
 0x3e2   : > { %2296 = vmatprep.subr.mxu1 %v3239_v1 }
 0x477   : > { %v1271_v36 = vpop.f32.mrb[6].mxu1 }
 0x478   : > { %v1272_v37 = vadd.f32 %v2064_v35, %v1271_v36  ;;  %v2225_v38 = vpop.f32.mrb[7].mxu1  ;;  %v1716_v35 = vld [vmem:[%s4203_s28 + $0x28] sm:$0xff] }
 0x479   : > { %v2466_v36 = vpack.c.bf16 %v1716_v35, %v1715_v34  ;;  %v1718_v38 = vld [vmem:[%s4203_s28 + $0x38] sm:$0xff] }
 0x47a   : > { %v1275_v39 = vsub.f32 0.0, %v1272_v37 }
 0x47c   : > { %v1276_v40 = vmul.f32 1.442695, %v1275_v39 }
 0x47e   : > { %2684 = vpow2.f32 %v1276_v40 }
 0x488   : > { %v2685_v41 = vpop.eup %2684 }
 0x489   : > { %v1278_v42 = vadd.f32 1.0, %v2685_v41 }
 0x48b   : > { %2686 = vrcp.f32 %v1278_v42  ;;  %v1719_v42 = vld [vmem:[%s4203_s28 + $0x40] sm:$0xff] }
 0x495   : > { %v2687_v44 = vpop.eup %2686 }
 0x496   : > { %1282 = vrot.lane.b32.xlu0 %v2687_v44, %s3240_s21  ;;  %v2472_v44 = vpack.c.bf16 %v1720_v43, %v1719_v42  ;;  %s827_s21 = scalar_lea.vmem [#allocation26], %s4204_s9  ;;  %s3243_s9 = smov [#allocation26]  }
 0x497   : > { %v1396_v46 = vpop.f32.mrb[8].mxu1  ;;  %s3126_s10 = sshll.u32 %s3243_s9, 4  ;;  %s3127_s10 = int_to_ptr.vmem [resolvable:$false] %s3126_s10 }
 0x498   : > { %v1398_v47 = vpop.f32.mrb[9].mxu1  ;;  %v1397_v56 = vadd.f32 %v1396_v46, %v1323_v55  ;;  %v1722_v46 = vld [vmem:[%s4203_s28 + $0x58] sm:$0xff]  ;;  %s3128_s2 = scalar_lea.vmem %s3127_s10, 256 }
 0x499   : > { %v1399_v49 = vadd.f32 %v1398_v47, %v1327_v45  ;;  %v1721_v45 = vld [vmem:[%s4203_s28 + $0x50] sm:$0xff] }
 0x49a   : > { %1409 = vrot.lane.b32.xlu0 %v3869_v51, %s3241_s7  ;;  %v2475_v47 = vpack.c.bf16 %v1722_v46, %v1721_v45  ;;  %s1817_s7 = sshll.u32 %s827_s21, 4  ;;  %s4051_s7 = int_to_ptr.vmem [resolvable:$true] %s1817_s7 }
 0x49b   : > { %v1401_v50 = vsub.f32 0.0, %v1399_v49  ;;  %v1723_v49 = vld [vmem:[%s4203_s28 + $0x60] sm:$0xff]  ;;  %s3122_s8 = scalar_lea.vmem %s4051_s7, 128  ;;  %p3129_p0 = scmp.lt.s32.totalorder %s4051_s7, %s3127_s10 }
 0x49c   : > { %p3123_p7 = scmp.ne.s32.totalorder %s4051_s7, %s3122_s8  ;;  %p3130_p2 = scmp.lt.s32.totalorder %s3128_s2, %s3122_s8 }
 0x49d   : > { %v1402_v52 = vmul.f32 1.442695, %v1401_v50  ;;  %v1724_v50 = vld [vmem:[%s4203_s28 + $0x68] sm:$0xff] }
 0x49e   : > { %p3124_p4 = pnand %p3123_p7, %p4207_p9  ;;  %p3131_p6 = por %p3130_p2, %p3129_p0 }
 0x49f   : > { %2688 = vpow2.f32 %v1402_v52  ;;  %v2478_v52 = vpack.c.bf16 %v1724_v50, %v1723_v49 }
 0x4a0   : > { %p3125_p8 = pneg %p3124_p4 }
 0x4a2   : > { %p3132_p5 = pnand %p3131_p6, %p3125_p8 }
 0x4a9   : > { %v2689_v53 = vpop.eup %2688 }
 0x4aa   : > { %v1404_v54 = vadd.f32 1.0, %v2689_v53  ;;  %v1725_v53 = vld [vmem:[%s4203_s28 + $0x70] sm:$0xff] }
 0x4ac   : > { %2690 = vrcp.f32 %v1404_v54  ;;  %v1726_v54 = vld [vmem:[%s4203_s28 + $0x78] sm:$0xff] }
 0x4ad   : > { %v2481_v55 = vpack.c.bf16 %v1726_v54, %v1725_v53 }
 0x4b6   : > { %v2691_v57 = vpop.eup %2690 }
 0x4b7   : > { %v1407_v30 = vmul.f32 %v2691_v57, %v1397_v56 }
 0x4b9   : > { %v1455_v59 = vadd.f32 %v1407_v30, %v3874_v58 }
 0x4bb   : > { %2259 = vmatmul.mubr.f32.vlgmr.msra.gmra.mrb[2].mxu0 %v1455_v59 }
 0x4bc   : > { %2333 = vmatprep.mubr.msk.f32.mxu0 %vm3238_vm0, %v3239_v1  ;;  %2461 = vmatpush3.bf16.msra.mxu0 %v2460_v31 }
 0x4bd   : > { %2462 = vmatprep.subr.bf16.mxu0 %v3237_v0 }
 0x4c0   : > { %2464 = vmatpush3.bf16.msra.mxu0 %v2463_v33 }
 0x4c1   : > { %2465 = vmatprep.subr.bf16.mxu0 %v3237_v0 }
 0x4c4   : > { %2467 = vmatpush3.bf16.msra.mxu0 %v2466_v36 }
 0x4c5   : > { %2468 = vmatprep.subr.bf16.mxu0 %v3237_v0 }
 0x508   : > { %v1283_v60 = vpop.permute.xlu0 %1282 }
 0x509   : > { %v1285_v51 = vmul.f32 %v1283_v60, %v1272_v37  ;;  %v1717_v37 = vld [vmem:[%s4203_s28 + $0x30] sm:$0xff] }
 0x50a   : > { %v2469_v40 = vpack.c.bf16 %v1718_v38, %v1717_v37 }
 0x50c   : > { %v1410_v61 = vpop.permute.xlu0 %1409  ;;  %2470 = vmatpush3.bf16.msra.mxu0 %v2469_v40 }
 0x50d   : > { %v1412_v62 = vadd.f32 %v1410_v61, %v1285_v51  ;;  %2471 = vmatprep.subr.bf16.mxu0 %v3237_v0 }
 0x50f   : > { %v1414_v63 = vsel %vm1413_vm6, %v1412_v62, 0.0 }
 0x510   : > { %1415 = vadd.xlane.f32.xlu1 %v1414_v63  ;;  %2473 = vmatpush3.bf16.msra.mxu0 %v2472_v44 }
 0x511   : > { %2474 = vmatprep.subr.bf16.mxu0 %v3237_v0 }
 0x514   : > { %2476 = vmatpush3.bf16.msra.mxu0 %v2475_v47 }
 0x515   : > { %2477 = vmatprep.subr.bf16.mxu0 %v3237_v0 }
 0x518   : > { %2479 = vmatpush3.bf16.msra.mxu0 %v2478_v52 }
 0x519   : > { %2480 = vmatprep.subr.bf16.mxu0 %v3237_v0  ;;  %v2069_v0 = vld [vmem:[#allocation25] ss:$0 sm:$0xff] }
 0x51c   : > { %2482 = vmatpush3.bf16.msra.mxu0 %v2481_v55 }
 0x58e   : > { %v1538_v2 = vpop.f32.mrb[2].mxu0 }
 0x58f   : > { %v3974_v28 = vsub.f32 %v1455_v59, %v1538_v2  ;;  %v2260_v48 = vpop.f32.mrb[3].mxu0  ;;  %v2068_v59 = vld [vmem:[#allocation23] ss:$0 sm:$0xff] }
 0x591   : > { %v1543_v3 = vmul.f32 %v3974_v28, %v3974_v28 }
 0x593   : > { %2294 = vmatmul.mubr.f32.vlgmr.msra.gmra.mrb[10].mxu1 %v1543_v3 }
 0x594   : > { %2298 = vmatprep.mubr.msk.f32.mxu1 %vm3238_vm0, %v3239_v1  ;;  %2297 = vmatpush3.msk.msra.mxu1 %vm1636_vm7, %v1632_v24 }
 0x59d   : > { %v1416_v58 = vpop.xlane.xlu1 %1415 }
 0x59e   : > { %v1418_v4 = vmul.f32 0.25, %v1416_v58 }
 0x5a0   : > { %v1419_v5 = vsub.f32 %v1412_v62, %v1418_v4 }
 0x5a2   : > { %v1420_v6 = vmul.f32 %v1419_v5, %v1419_v5 }
 0x5a4   : > { %v1421_v7 = vsel %vm1413_vm6, %v1420_v6, 0.0 }
 0x5a5   : > { %1422 = vadd.xlane.f32.xlu1 %v1421_v7 }
 0x632   : > { %v1423_v8 = vpop.xlane.xlu1 %1422 }
 0x633   : > { %v1424_v9 = vmul.f32 0.25, %v1423_v8 }
 0x635   : > { %v1425_v10 = vadd.f32 1e-05, %v1424_v9 }
 0x637   : > { %2692 = vrsqrt.f32 %v1425_v10 }
 0x641   : > { %v2693_v11 = vpop.eup %2692 }
 0x642   : > { %v1427_v13 = vmul.f32 %v2693_v11, %v1419_v5 }
 0x644   : > { %v1435_v15 = vmul.f32 %v2066_v12, %v1427_v13 }
 0x646   : > { %v1443_v16 = vadd.f32 %v2067_v14, %v1435_v15 }
 0x648   : > { %v1444_v17 = vsel %vm1413_vm6, %v1443_v16, -inf }
 0x649   : > { %1445 = vmax.xlane.f32.xlu0 %v1444_v17 }
 0x666   : > { %v1610_v1 = vpop.f32.mrb[10].mxu1 }
 0x667   : > { %v2295_v18 = vpop.f32.mrb[11].mxu1  ;;  %v1611_v56 = vadd.f32 1e-05, %v1610_v1 }
 0x6d6   : > { %v1446_v19 = vpop.xlane.xlu0 %1445 }
 0x6d7   : > { %v1447_v20 = vsub.f32 %v1443_v16, %v1446_v19 }
 0x6d9   : > { %v1448_v21 = vmul.f32 1.442695, %v1447_v20 }
 0x6db   : > { %2694 = vpow2.f32 %v1448_v21 }
 0x6e5   : > { %v2695_v22 = vpop.eup %2694 }
 0x6e6   : > { %v1450_v23 = vsel %vm1413_vm6, %v2695_v22, 0.0 }
 0x6e7   : > { %1451 = vadd.xlane.f32.xlu1 %v1450_v23 }
 0x774   : > { %v1452_v25 = vpop.xlane.xlu1 %1451 }
 0x775   : > { %2696 = vrcp.f32 %v1452_v25 }
 0x776   : > { %2698 = vrsqrt.f32 %v1611_v56 }
 0x77f   : > { %v2697_v39 = vpop.eup %2696 }
 0x780   : > { %v1454_v41 = vmul.f32 %v2697_v39, %v2695_v22  ;;  %v2699_v57 = vpop.eup %2698 }
 0x781   : > { %v1615_v30 = vmul.f32 %v2699_v57, %v3974_v28 }
 0x782   : > { %1797 = vrot.lane.b32.xlu1 %v1454_v41, %s3242_s3  ;;  %2299 = vmatmul.mubr.msk.f32.vlgmr.msra.gmra.mrb[12].mxu1 %vm1413_vm6, %v1454_v41  ;;  %s4206_s3 = smov %s4205_s1 }
 0x783   : > { %v1623_v60 = vmul.f32 %v2068_v59, %v1615_v30 }
 0x785   : > { %v1631_v51 = vadd.f32 %v2069_v0, %v1623_v60 }
 0x7f4   : > { %v1798_v2 = vpop.permute.xlu1 %1797 }
 0x855   : > { %v1706_v61 = vpop.f32.mrb[12].mxu1 }
 0x856   : > { %v1710_v62 = vmul.f32 %v1706_v61, %v1631_v51  ;;  %v2300_v63 = vpop.f32.mrb[13].mxu1 }
 0x858   : > { %2334 = vmatmul.mubr.f32.vlgmr.msra.gmra.mrb[4].mxu0 %v1710_v62 }
 0x92b   : > { %v1793_v48 = vpop.f32.mrb[4].mxu0 }
 0x92c   : > { %v1800_v28 = vsel %vm1024_vm3, %v1793_v48, %v1798_v2  ;;  %v2335_v3 = vpop.f32.mrb[5].mxu0 }
 0x92d   : > { %1802 = vst.msk [vmem:[%s827_s21] sm:$0xff] %vm1801_vm8, %v1800_v28 }
 0x92e   : > { %3135 = shalt.err (!%p3132_p5)
}
 0x92f   : > { %s3136_s0 = scalar_lea.hbm %s4049_s17, 128  ;;  %s3140_s18 = scalar_lea.hbm %s4206_s3, 256 }
 0x930   : > { %p3137_p10 = scmp.ne.s32.totalorder %s4049_s17, %s3136_s0  ;;  %p3141_p12 = scmp.lt.u32.totalorder %s4049_s17, %s4206_s3 }
 0x931   : > { %p3142_p13 = scmp.lt.u32.totalorder %s3140_s18, %s3136_s0  ;;  %p3144_p7 = scmp.lt.u32.totalorder %s3136_s0, %s4049_s17 }
 0x932   : > { %p3138_p1 = pnand %p3137_p10, %p4207_p9 }
 0x933   : > { %p3143_p3 = por %p3142_p13, %p3141_p12 }
 0x934   : > { %p3139_p11 = pneg %p3138_p1 }
 0x935   : > { %p3145_p4 = por %p3144_p7, %p3143_p3 }
 0x937   : > { %p3146_p8 = pnand %p3145_p4, %p3139_p11 }
 0x939   : > { %3149 = shalt.err (!%p3146_p8)
}
 0x93a   : > { %2541 = dma.vmem_to_hbm [thread:$0]  (%p4207_p9), %s4051_s7, 128, %s4049_s17, %s1804_s5  }
 0x93b PF: > { %s4208_s8 = sld [smem:[#allocation36_spill]]  ;;  %p4209_p0 = scmp.ne.s32.totalorder %s4179_s25, 0 }
 0x93c   : > { %p4210_p2 = scmp.ge.s32.totalorder %s3216_s24, 2 }
 0x93e   : > { %p2591_p6 = pnand %p4210_p2, %p4209_p0 }
 0x941   : > { %s1829_s9 = sand.u32 1, %s4208_s8  }
 0x942   : > { %s1830_s2 = scalar_lea.sflag [#allocation4], %s1829_s9 }
 0x943   : > { %3199 = dma.done.wait (!%p2591_p6), %s1830_s2, 128  }
 0x944   : > { %3201 = vsyncadd (!%p2591_p6), %s1830_s2, 4294967168  ;;  %p40_p5 = scmp.ge.s32.totalorder %s3677_s4, 4   ;;  %s4211_s1 = smov %s3208_s22 }
 0x945   : > { %s4212_s22 = smov %s3212_s23  ;;  %s4213_s23 = smov %s3688_s30 }
 0x946   : > { %s4214_s24 = smov %s3677_s4  ;;  %42 = sbr.rel (!%p40_p5) target bundleno = 29 (0x1d), region = 201 }
 0x94d   :  { %1835 = vsyncpa [#allocation3], 1 }
 0x94e   :  { %1837 = vsyncpa [#allocation3 + $0x1], 1 }
 0x94f   :  { %1838 = vsyncpa [#allocation6], 1 }
 0x950   :  { %1839 = vsyncpa [#allocation9], 1 }
 0x951   :  { %1840 = vsyncpa [#allocation12], 1 }
 0x952   :  { %1841 = vsyncpa [#allocation15], 1 }
 0x953   :  { %1842 = vsyncpa [#allocation18], 1 }
 0x954   :  { %1843 = vsyncpa [#allocation21], 1 }
 0x955   :  { %1844 = vsyncpa [#allocation24], 1 }
 0x956   :  { %1845 = vsyncpa [#allocation4], 1 }
 0x957   :  { %1847 = vsyncpa [#allocation4 + $0x1], 1 }

</bundles_post_ra>
